<compile_context>
chip_gen: v6e
topology: v6e:2x2x1
jax: 0.10.0
libtpu: 0.0.40
codegen_flags: <defaults>
</compile_context>

<pallas_src>
import functools

import jax
import jax.numpy as jnp
from jax.experimental import pallas as pl
from jax.experimental.pallas import tpu as pltpu

_LANES = 128


def _dwconv_kernel(x_ref, w_ref, o_ref, *, KH, KW, Ho, Wo, RH):
    # x_ref : (Hp, Wp, TC)   zero-padded input tile, channels on the lane axis
    # w_ref : (KH*KW, TC)    one lane-dense weight row per tap (f32)
    # o_ref : (Ho, Wo, TC)   output tile
    w = w_ref[...].astype(jnp.float32)          # tiny; no-op for f32 weights
    taps = [w[k] for k in range(KH * KW)]       # hoisted (TC,) lane vectors

    # Row-chunked so each chunk's f32 accumulator stays register-resident.
    for r0 in range(0, Ho, RH):
        rh = min(RH, Ho - r0)
        acc = None                              # vreg accumulator (no VMEM RMW)
        for kh in range(KH):
            # One aligned full-width load per kh; the kw shifts below are value
            # slices (register/XLU work), not per-tap ref re-slices.
            row = x_ref[r0 + kh:r0 + kh + rh, :, :].astype(jnp.float32)
            for kw in range(KW):
                prod = row[:, kw:kw + Wo, :] * taps[kh * KW + kw]
                acc = prod if acc is None else acc + prod   # peeled first tap
        o_ref[r0:r0 + rh, :, :] = acc.astype(o_ref.dtype)   # single store / chunk


def _vmem_budget_bytes():
    """Generation-aware (tile budget, compiler scoped-VMEM limit), in bytes."""
    cap = 64 * 1024 * 1024                      # conservative default (v7x per-core)
    try:
        info = pltpu.get_tpu_info()
        cap = int(getattr(info, "vmem_capacity_bytes", cap)) or cap
    except Exception:
        pass
    # ~65% of physical, clamped: ~41 MiB on v7x (64 MiB), ~83 MiB on v5e/v6e (128 MiB).
    budget = min(96 << 20, max(32 << 20, int(cap * 0.65)))
    limit = min(cap, budget + (8 << 20))
    return budget, limit


def _pick_channel_tile(C_pad, Hp, Wp, Ho, Wo, KHKW, in_bytes, out_bytes, budget):
    """Largest lane-aligned channel tile whose double-buffered set fits the budget."""
    def bytes_needed(tc):
        b = 2 * Hp * Wp * in_bytes              # double-buffered input block
        b += 2 * Ho * Wo * out_bytes            # double-buffered output block
        b += 2 * KHKW * 4                       # double-buffered weight block
        return b * tc

    for tc in range(C_pad, 0, -_LANES):
        if C_pad % tc == 0 and bytes_needed(tc) <= budget:
            return tc
    # TODO(synk): add a halo'd output-row grid axis (spatial tiling) for shapes
    # where even a single 128-channel tile exceeds the VMEM budget.
    return _LANES


def dwconv(x, weight, padding=0):
    """Depthwise conv2d, stride=1, dilation=1, no bias.

    x:      (N, C, H, W)
    weight: (C, 1, KH, KW)   (PyTorch depthwise conv weight layout)
    """
    N, C, H, W = x.shape
    assert weight.shape[0] == C and weight.shape[1] == 1
    KH, KW = int(weight.shape[2]), int(weight.shape[3])
    p = int(padding)
    Ho = H + 2 * p - (KH - 1)
    Wo = W + 2 * p - (KW - 1)
    Hp, Wp = H + 2 * p, W + 2 * p
    assert Ho > 0 and Wo > 0

    # Pad channels to a lane multiple (lane-dense stores, safe tile search).
    C_pad = max(_LANES, ((C + _LANES - 1) // _LANES) * _LANES)

    # Layout plumbing: NCHW -> NHWC with the spatial zero-halo and channel
    # padding fused into the same XLA copy (the transpose already costs one
    # HBM pass; the pad rides along), so the kernel needs no padding scratch.
    x_nhwc = jnp.transpose(x, (0, 2, 3, 1))                          # (N, H, W, C)
    x_pad = jnp.pad(x_nhwc, ((0, 0), (p, p), (p, p), (0, C_pad - C)))
    w_taps = jnp.transpose(weight.reshape(C, KH * KW), (1, 0))       # (KH*KW, C)
    w_taps = jnp.pad(w_taps.astype(jnp.float32), ((0, 0), (0, C_pad - C)))

    in_bytes = jnp.dtype(x.dtype).itemsize
    budget, vmem_limit = _vmem_budget_bytes()
    TC = _pick_channel_tile(C_pad, Hp, Wp, Ho, Wo, KH * KW,
                            in_bytes, in_bytes, budget)
    # Keep each row-chunk's f32 accumulator around <=64 KiB of vregs.
    RH = max(1, min(Ho, (64 * 1024) // max(1, Wo * TC * 4)))

    kernel = functools.partial(_dwconv_kernel, KH=KH, KW=KW, Ho=Ho, Wo=Wo, RH=RH)

    out_nhwc = pl.pallas_call(
        kernel,
        out_shape=jax.ShapeDtypeStruct((N, Ho, Wo, C_pad), x.dtype),
        grid_spec=pltpu.PrefetchScalarGridSpec(
            num_scalar_prefetch=0,
            # Channel-tile axis slow -> weight block stays resident across batch.
            grid=(C_pad // TC, N),
            in_specs=[
                pl.BlockSpec((None, Hp, Wp, TC), lambda c, n: (n, 0, 0, c)),
                pl.BlockSpec((KH * KW, TC), lambda c, n: (0, c)),
            ],
            out_specs=pl.BlockSpec((None, Ho, Wo, TC), lambda c, n: (n, 0, 0, c)),
        ),
        compiler_params=pltpu.CompilerParams(
            # Both grid axes independent -> shard across TensorCores on v7x.
            dimension_semantics=("parallel", "parallel"),
            vmem_limit_bytes=vmem_limit,
        ),
    )(x_pad, w_taps)

    if C_pad != C:
        out_nhwc = out_nhwc[..., :C]
    return jnp.transpose(out_nhwc, (0, 3, 1, 2))                     # back to NCHW


class DWConv:
    """JAX mirror of the PyTorch DWConv module (forward only)."""

    def __init__(self, channels, kernel_size, padding=0, bias=False, key=None):
        assert bias is False
        self.channels = channels
        self.kernel_size = kernel_size
        self.padding = padding
        if key is None:
            key = jax.random.PRNGKey(0)
        # Deterministic init (kaiming-uniform-ish bound, like nn.Conv2d).
        fan_in = kernel_size * kernel_size       # in_channels/groups == 1
        bound = 1.0 / (fan_in ** 0.5)
        self.weight = jax.random.uniform(
            key, (channels, 1, kernel_size, kernel_size),
            minval=-bound, maxval=bound, dtype=jnp.float32)

    def __call__(self, x):
        return dwconv(x, self.weight, padding=self.padding)


if __name__ == "__main__":
    key = jax.random.PRNGKey(0)
    kx, kw = jax.random.split(key)

    N, C, H, W = 2, 4, 16, 16
    ksize, pad = 3, 1

    x = jax.random.normal(kx, (N, C, H, W), dtype=jnp.float32)
    mod = DWConv(C, ksize, padding=pad, bias=False, key=kw)

    out = jax.block_until_ready(mod(x))

    # Quiet correctness check against lax grouped conv (depthwise).
    ref = jax.lax.conv_general_dilated(
        x, mod.weight, window_strides=(1, 1), padding=[(pad, pad), (pad, pad)],
        dimension_numbers=("NCHW", "OIHW", "NCHW"), feature_group_count=C)
    assert out.shape == ref.shape
    assert jnp.max(jnp.abs(out - ref)) < 1e-5

    print("KERNEL_OK")
</pallas_src>

<mosaic_0001>
module attributes {stable_mosaic.version = 11 : i64} {
  func.func @_dwconv_kernel(%arg0: i32, %arg1: i32, %arg2: memref<1x18x18x128xf32, #tpu.memory_space<vmem>>, %arg3: memref<9x128xf32, #tpu.memory_space<vmem>>, %arg4: memref<1x16x16x128xf32, #tpu.memory_space<vmem>>) attributes {dimension_semantics = [#tpu.dimension_semantics<parallel>, #tpu.dimension_semantics<parallel>], iteration_bounds = array<i64: 1, 2>, scalar_prefetch = 0 : i64, scratch_operands = 0 : i64, tpu.core_type = #tpu.core_type<tc>, window_params = [{transform_indices = @transform_0, window_bounds = array<i64: 1, 18, 18, 128>}, {transform_indices = @transform_1, window_bounds = array<i64: 9, 128>}, {transform_indices = @transform_2, window_bounds = array<i64: 1, 16, 16, 128>}]} {
    %c0 = arith.constant 0 : index
    %c0_0 = arith.constant 0 : index
    %0 = vector.load %arg3[%c0, %c0_0] : memref<9x128xf32, #tpu.memory_space<vmem>>, vector<9x128xf32>
    %1 = vector.extract_strided_slice %0 {offsets = [0, 0], sizes = [1, 128], strides = [1, 1]} : vector<9x128xf32> to vector<1x128xf32>
    %2 = vector.shape_cast %1 : vector<1x128xf32> to vector<128xf32>
    %3 = vector.extract_strided_slice %0 {offsets = [1, 0], sizes = [1, 128], strides = [1, 1]} : vector<9x128xf32> to vector<1x128xf32>
    %4 = vector.shape_cast %3 : vector<1x128xf32> to vector<128xf32>
    %5 = vector.extract_strided_slice %0 {offsets = [2, 0], sizes = [1, 128], strides = [1, 1]} : vector<9x128xf32> to vector<1x128xf32>
    %6 = vector.shape_cast %5 : vector<1x128xf32> to vector<128xf32>
    %7 = vector.extract_strided_slice %0 {offsets = [3, 0], sizes = [1, 128], strides = [1, 1]} : vector<9x128xf32> to vector<1x128xf32>
    %8 = vector.shape_cast %7 : vector<1x128xf32> to vector<128xf32>
    %9 = vector.extract_strided_slice %0 {offsets = [4, 0], sizes = [1, 128], strides = [1, 1]} : vector<9x128xf32> to vector<1x128xf32>
    %10 = vector.shape_cast %9 : vector<1x128xf32> to vector<128xf32>
    %11 = vector.extract_strided_slice %0 {offsets = [5, 0], sizes = [1, 128], strides = [1, 1]} : vector<9x128xf32> to vector<1x128xf32>
    %12 = vector.shape_cast %11 : vector<1x128xf32> to vector<128xf32>
    %13 = vector.extract_strided_slice %0 {offsets = [6, 0], sizes = [1, 128], strides = [1, 1]} : vector<9x128xf32> to vector<1x128xf32>
    %14 = vector.shape_cast %13 : vector<1x128xf32> to vector<128xf32>
    %15 = vector.extract_strided_slice %0 {offsets = [7, 0], sizes = [1, 128], strides = [1, 1]} : vector<9x128xf32> to vector<1x128xf32>
    %16 = vector.shape_cast %15 : vector<1x128xf32> to vector<128xf32>
    %17 = vector.extract_strided_slice %0 {offsets = [8, 0], sizes = [1, 128], strides = [1, 1]} : vector<9x128xf32> to vector<1x128xf32>
    %18 = vector.shape_cast %17 : vector<1x128xf32> to vector<128xf32>
    %c0_1 = arith.constant 0 : index
    %c0_2 = arith.constant 0 : index
    %c0_3 = arith.constant 0 : index
    %c0_4 = arith.constant 0 : index
    %19 = vector.load %arg2[%c0_1, %c0_2, %c0_3, %c0_4] : memref<1x18x18x128xf32, #tpu.memory_space<vmem>>, vector<1x8x18x128xf32>
    %20 = vector.shape_cast %19 : vector<1x8x18x128xf32> to vector<8x18x128xf32>
    %21 = vector.extract_strided_slice %20 {offsets = [0, 0, 0], sizes = [8, 16, 128], strides = [1, 1, 1]} : vector<8x18x128xf32> to vector<8x16x128xf32>
    %22 = vector.shape_cast %2 : vector<128xf32> to vector<1x1x128xf32>
    %23 = vector.broadcast %22 : vector<1x1x128xf32> to vector<8x16x128xf32>
    %24 = arith.mulf %21, %23 : vector<8x16x128xf32>
    %25 = vector.extract_strided_slice %20 {offsets = [0, 1, 0], sizes = [8, 16, 128], strides = [1, 1, 1]} : vector<8x18x128xf32> to vector<8x16x128xf32>
    %26 = vector.shape_cast %4 : vector<128xf32> to vector<1x1x128xf32>
    %27 = vector.broadcast %26 : vector<1x1x128xf32> to vector<8x16x128xf32>
    %28 = arith.mulf %25, %27 : vector<8x16x128xf32>
    %29 = arith.addf %24, %28 : vector<8x16x128xf32>
    %30 = vector.extract_strided_slice %20 {offsets = [0, 2, 0], sizes = [8, 16, 128], strides = [1, 1, 1]} : vector<8x18x128xf32> to vector<8x16x128xf32>
    %31 = vector.shape_cast %6 : vector<128xf32> to vector<1x1x128xf32>
    %32 = vector.broadcast %31 : vector<1x1x128xf32> to vector<8x16x128xf32>
    %33 = arith.mulf %30, %32 : vector<8x16x128xf32>
    %34 = arith.addf %29, %33 : vector<8x16x128xf32>
    %c0_5 = arith.constant 0 : index
    %c1 = arith.constant 1 : index
    %c0_6 = arith.constant 0 : index
    %c0_7 = arith.constant 0 : index
    %35 = vector.load %arg2[%c0_5, %c1, %c0_6, %c0_7] : memref<1x18x18x128xf32, #tpu.memory_space<vmem>>, vector<1x8x18x128xf32>
    %36 = vector.shape_cast %35 : vector<1x8x18x128xf32> to vector<8x18x128xf32>
    %37 = vector.extract_strided_slice %36 {offsets = [0, 0, 0], sizes = [8, 16, 128], strides = [1, 1, 1]} : vector<8x18x128xf32> to vector<8x16x128xf32>
    %38 = vector.shape_cast %8 : vector<128xf32> to vector<1x1x128xf32>
    %39 = vector.broadcast %38 : vector<1x1x128xf32> to vector<8x16x128xf32>
    %40 = arith.mulf %37, %39 : vector<8x16x128xf32>
    %41 = arith.addf %34, %40 : vector<8x16x128xf32>
    %42 = vector.extract_strided_slice %36 {offsets = [0, 1, 0], sizes = [8, 16, 128], strides = [1, 1, 1]} : vector<8x18x128xf32> to vector<8x16x128xf32>
    %43 = vector.shape_cast %10 : vector<128xf32> to vector<1x1x128xf32>
    %44 = vector.broadcast %43 : vector<1x1x128xf32> to vector<8x16x128xf32>
    %45 = arith.mulf %42, %44 : vector<8x16x128xf32>
    %46 = arith.addf %41, %45 : vector<8x16x128xf32>
    %47 = vector.extract_strided_slice %36 {offsets = [0, 2, 0], sizes = [8, 16, 128], strides = [1, 1, 1]} : vector<8x18x128xf32> to vector<8x16x128xf32>
    %48 = vector.shape_cast %12 : vector<128xf32> to vector<1x1x128xf32>
    %49 = vector.broadcast %48 : vector<1x1x128xf32> to vector<8x16x128xf32>
    %50 = arith.mulf %47, %49 : vector<8x16x128xf32>
    %51 = arith.addf %46, %50 : vector<8x16x128xf32>
    %c0_8 = arith.constant 0 : index
    %c2 = arith.constant 2 : index
    %c0_9 = arith.constant 0 : index
    %c0_10 = arith.constant 0 : index
    %52 = vector.load %arg2[%c0_8, %c2, %c0_9, %c0_10] : memref<1x18x18x128xf32, #tpu.memory_space<vmem>>, vector<1x8x18x128xf32>
    %53 = vector.shape_cast %52 : vector<1x8x18x128xf32> to vector<8x18x128xf32>
    %54 = vector.extract_strided_slice %53 {offsets = [0, 0, 0], sizes = [8, 16, 128], strides = [1, 1, 1]} : vector<8x18x128xf32> to vector<8x16x128xf32>
    %55 = vector.shape_cast %14 : vector<128xf32> to vector<1x1x128xf32>
    %56 = vector.broadcast %55 : vector<1x1x128xf32> to vector<8x16x128xf32>
    %57 = arith.mulf %54, %56 : vector<8x16x128xf32>
    %58 = arith.addf %51, %57 : vector<8x16x128xf32>
    %59 = vector.extract_strided_slice %53 {offsets = [0, 1, 0], sizes = [8, 16, 128], strides = [1, 1, 1]} : vector<8x18x128xf32> to vector<8x16x128xf32>
    %60 = vector.shape_cast %16 : vector<128xf32> to vector<1x1x128xf32>
    %61 = vector.broadcast %60 : vector<1x1x128xf32> to vector<8x16x128xf32>
    %62 = arith.mulf %59, %61 : vector<8x16x128xf32>
    %63 = arith.addf %58, %62 : vector<8x16x128xf32>
    %64 = vector.extract_strided_slice %53 {offsets = [0, 2, 0], sizes = [8, 16, 128], strides = [1, 1, 1]} : vector<8x18x128xf32> to vector<8x16x128xf32>
    %65 = vector.shape_cast %18 : vector<128xf32> to vector<1x1x128xf32>
    %66 = vector.broadcast %65 : vector<1x1x128xf32> to vector<8x16x128xf32>
    %67 = arith.mulf %64, %66 : vector<8x16x128xf32>
    %68 = arith.addf %63, %67 : vector<8x16x128xf32>
    %c0_11 = arith.constant 0 : index
    %c0_12 = arith.constant 0 : index
    %c0_13 = arith.constant 0 : index
    %c0_14 = arith.constant 0 : index
    %69 = vector.load %arg4[%c0_11, %c0_12, %c0_13, %c0_14] : memref<1x16x16x128xf32, #tpu.memory_space<vmem>>, vector<1x8x16x128xf32>
    %70 = vector.shape_cast %69 : vector<1x8x16x128xf32> to vector<8x16x128xf32>
    %71 = vector.shape_cast %68 : vector<8x16x128xf32> to vector<1x8x16x128xf32>
    tpu.vector_store %arg4[%c0_11, %c0_12, %c0_13, %c0_14], %71 {strides = array<i32>} : memref<1x16x16x128xf32, #tpu.memory_space<vmem>>, vector<1x8x16x128xf32>,
    %c0_15 = arith.constant 0 : index
    %c8 = arith.constant 8 : index
    %c0_16 = arith.constant 0 : index
    %c0_17 = arith.constant 0 : index
    %72 = vector.load %arg2[%c0_15, %c8, %c0_16, %c0_17] : memref<1x18x18x128xf32, #tpu.memory_space<vmem>>, vector<1x8x18x128xf32>
    %73 = vector.shape_cast %72 : vector<1x8x18x128xf32> to vector<8x18x128xf32>
    %74 = vector.extract_strided_slice %73 {offsets = [0, 0, 0], sizes = [8, 16, 128], strides = [1, 1, 1]} : vector<8x18x128xf32> to vector<8x16x128xf32>
    %75 = vector.shape_cast %2 : vector<128xf32> to vector<1x1x128xf32>
    %76 = vector.broadcast %75 : vector<1x1x128xf32> to vector<8x16x128xf32>
    %77 = arith.mulf %74, %76 : vector<8x16x128xf32>
    %78 = vector.extract_strided_slice %73 {offsets = [0, 1, 0], sizes = [8, 16, 128], strides = [1, 1, 1]} : vector<8x18x128xf32> to vector<8x16x128xf32>
    %79 = vector.shape_cast %4 : vector<128xf32> to vector<1x1x128xf32>
    %80 = vector.broadcast %79 : vector<1x1x128xf32> to vector<8x16x128xf32>
    %81 = arith.mulf %78, %80 : vector<8x16x128xf32>
    %82 = arith.addf %77, %81 : vector<8x16x128xf32>
    %83 = vector.extract_strided_slice %73 {offsets = [0, 2, 0], sizes = [8, 16, 128], strides = [1, 1, 1]} : vector<8x18x128xf32> to vector<8x16x128xf32>
    %84 = vector.shape_cast %6 : vector<128xf32> to vector<1x1x128xf32>
    %85 = vector.broadcast %84 : vector<1x1x128xf32> to vector<8x16x128xf32>
    %86 = arith.mulf %83, %85 : vector<8x16x128xf32>
    %87 = arith.addf %82, %86 : vector<8x16x128xf32>
    %c0_18 = arith.constant 0 : index
    %c9 = arith.constant 9 : index
    %c0_19 = arith.constant 0 : index
    %c0_20 = arith.constant 0 : index
    %88 = vector.load %arg2[%c0_18, %c9, %c0_19, %c0_20] : memref<1x18x18x128xf32, #tpu.memory_space<vmem>>, vector<1x8x18x128xf32>
    %89 = vector.shape_cast %88 : vector<1x8x18x128xf32> to vector<8x18x128xf32>
    %90 = vector.extract_strided_slice %89 {offsets = [0, 0, 0], sizes = [8, 16, 128], strides = [1, 1, 1]} : vector<8x18x128xf32> to vector<8x16x128xf32>
    %91 = vector.shape_cast %8 : vector<128xf32> to vector<1x1x128xf32>
    %92 = vector.broadcast %91 : vector<1x1x128xf32> to vector<8x16x128xf32>
    %93 = arith.mulf %90, %92 : vector<8x16x128xf32>
    %94 = arith.addf %87, %93 : vector<8x16x128xf32>
    %95 = vector.extract_strided_slice %89 {offsets = [0, 1, 0], sizes = [8, 16, 128], strides = [1, 1, 1]} : vector<8x18x128xf32> to vector<8x16x128xf32>
    %96 = vector.shape_cast %10 : vector<128xf32> to vector<1x1x128xf32>
    %97 = vector.broadcast %96 : vector<1x1x128xf32> to vector<8x16x128xf32>
    %98 = arith.mulf %95, %97 : vector<8x16x128xf32>
    %99 = arith.addf %94, %98 : vector<8x16x128xf32>
    %100 = vector.extract_strided_slice %89 {offsets = [0, 2, 0], sizes = [8, 16, 128], strides = [1, 1, 1]} : vector<8x18x128xf32> to vector<8x16x128xf32>
    %101 = vector.shape_cast %12 : vector<128xf32> to vector<1x1x128xf32>
    %102 = vector.broadcast %101 : vector<1x1x128xf32> to vector<8x16x128xf32>
    %103 = arith.mulf %100, %102 : vector<8x16x128xf32>
    %104 = arith.addf %99, %103 : vector<8x16x128xf32>
    %c0_21 = arith.constant 0 : index
    %c10 = arith.constant 10 : index
    %c0_22 = arith.constant 0 : index
    %c0_23 = arith.constant 0 : index
    %105 = vector.load %arg2[%c0_21, %c10, %c0_22, %c0_23] : memref<1x18x18x128xf32, #tpu.memory_space<vmem>>, vector<1x8x18x128xf32>
    %106 = vector.shape_cast %105 : vector<1x8x18x128xf32> to vector<8x18x128xf32>
    %107 = vector.extract_strided_slice %106 {offsets = [0, 0, 0], sizes = [8, 16, 128], strides = [1, 1, 1]} : vector<8x18x128xf32> to vector<8x16x128xf32>
    %108 = vector.shape_cast %14 : vector<128xf32> to vector<1x1x128xf32>
    %109 = vector.broadcast %108 : vector<1x1x128xf32> to vector<8x16x128xf32>
    %110 = arith.mulf %107, %109 : vector<8x16x128xf32>
    %111 = arith.addf %104, %110 : vector<8x16x128xf32>
    %112 = vector.extract_strided_slice %106 {offsets = [0, 1, 0], sizes = [8, 16, 128], strides = [1, 1, 1]} : vector<8x18x128xf32> to vector<8x16x128xf32>
    %113 = vector.shape_cast %16 : vector<128xf32> to vector<1x1x128xf32>
    %114 = vector.broadcast %113 : vector<1x1x128xf32> to vector<8x16x128xf32>
    %115 = arith.mulf %112, %114 : vector<8x16x128xf32>
    %116 = arith.addf %111, %115 : vector<8x16x128xf32>
    %117 = vector.extract_strided_slice %106 {offsets = [0, 2, 0], sizes = [8, 16, 128], strides = [1, 1, 1]} : vector<8x18x128xf32> to vector<8x16x128xf32>
    %118 = vector.shape_cast %18 : vector<128xf32> to vector<1x1x128xf32>
    %119 = vector.broadcast %118 : vector<1x1x128xf32> to vector<8x16x128xf32>
    %120 = arith.mulf %117, %119 : vector<8x16x128xf32>
    %121 = arith.addf %116, %120 : vector<8x16x128xf32>
    %c0_24 = arith.constant 0 : index
    %c8_25 = arith.constant 8 : index
    %c0_26 = arith.constant 0 : index
    %c0_27 = arith.constant 0 : index
    %122 = vector.load %arg4[%c0_24, %c8_25, %c0_26, %c0_27] : memref<1x16x16x128xf32, #tpu.memory_space<vmem>>, vector<1x8x16x128xf32>
    %123 = vector.shape_cast %122 : vector<1x8x16x128xf32> to vector<8x16x128xf32>
    %124 = vector.shape_cast %121 : vector<8x16x128xf32> to vector<1x8x16x128xf32>
    tpu.vector_store %arg4[%c0_24, %c8_25, %c0_26, %c0_27], %124 {strides = array<i32>} : memref<1x16x16x128xf32, #tpu.memory_space<vmem>>, vector<1x8x16x128xf32>,
    return
  }
  func.func @transform_0(%arg0: i32, %arg1: i32) -> (i32, i32, i32, i32) {
    %c0_i32 = arith.constant 0 : i32
    %c0_i32_0 = arith.constant 0 : i32
    %c0_i32_1 = arith.constant 0 : i32
    return %arg1, %c0_i32, %c0_i32_0, %arg0 : i32, i32, i32, i32
  }
  func.func @transform_1(%arg0: i32, %arg1: i32) -> (i32, i32) {
    %c0_i32 = arith.constant 0 : i32
    %c0_i32_0 = arith.constant 0 : i32
    return %c0_i32, %arg0 : i32, i32
  }
  func.func @transform_2(%arg0: i32, %arg1: i32) -> (i32, i32, i32, i32) {
    %c0_i32 = arith.constant 0 : i32
    %c0_i32_0 = arith.constant 0 : i32
    %c0_i32_1 = arith.constant 0 : i32
    return %arg1, %c0_i32, %c0_i32_0, %arg0 : i32, i32, i32, i32
  }
}

</mosaic_0001>

<bundles_post_ra>
// kernel: tpu_custom_call.1
= control target key start
LH: loop header
LB: loop body
LE: loop exit
PB: predicated region body
PF: predicated region fallthrough
CT: control target
= control target key end

     0   :  { %7 = vsyncpa [#allocation3], 0  ;;  %s3759_s0 = inlined_call_operand.vmem [shape: f32[2,18,18,128], index: 0, kind: input, shape index: {}]   ;;  %s3760_s1 = inlined_call_operand.vmem [shape: f32[9,128], index: 1, kind: input, shape index: {}]   ;;  %s3761_s2 = inlined_call_operand.hbm [shape: f32[2,16,16,128], index: 2, kind: output, shape index: {}]  }
   0x1   :  { %9 = vsyncpa [#allocation3 + $0x1], 0  ;;  %s2421_s9 = smov 0   ;;  %s2423_s10 = smov 0  }
   0x2   :  { %s2425_s11 = smov 0   ;;  %s2427_s12 = smov 0  }
   0x3   :  { %s2429_s13 = smov 0   ;;  %s2431_s14 = smov 0  }
   0x4 LB: > { %s2114_s15 = sadd.s32 4294967295, %s2401_s14   ;;  %s2115_s16 = sadd.s32 4294967294, %s2401_s14   ;;  %s2401_s14 = sphi %s2431_s14, %s15_s14   ;;  %s2397_s13 = sphi %s2429_s13, %s3768_s13   ;;  %s2393_s12 = sphi %s2427_s12, %s3767_s12   ;;  %s2389_s11 = sphi %s2425_s11, %s3766_s11   ;;  %s2385_s10 = sphi %s2423_s10, %s3765_s10   ;;  %s2381_s9 = sphi %s2421_s9, %s3764_s9  }
   0x5   : > { %s24_s17 = sadd.s32 1, %s2397_s13  ;;  %s90_s18 = sadd.s32 1, %s2389_s11 }
   0x6   : > { %p25_p0 = scmp.ge.s32.totalorder %s24_s17, 2  ;;  %p100_p1 = scmp.ne.s32.totalorder %s2389_s11, %s2385_s10 }
   0x7   : > { %p101_p2 = scmp.eq.s32.totalorder %s2114_s15, 1  ;;  %p106_p3 = scmp.ne.s32.totalorder %s2385_s10, %s2381_s9 }
   0x8   : > { %s3770_s17 = smov (%p25_p0, %s24_s17), 0  ;;  %p107_p5 = scmp.eq.s32.totalorder %s2115_s16, 1 }
   0x9   : > { %p2461_p4 = por %p101_p2, %p100_p1  ;;  %s85_s20 = ssub.s32 %s2397_s13, %s3770_s17 }
   0xa   : > { %p2119_p6 = scmp.ge.s32.totalorder %s2401_s14, 1  ;;  %p88_p7 = scmp.eq.s32.totalorder %s85_s20, 0 }
   0xb   : > { %p2468_p8 = por %p107_p5, %p106_p3  ;;  %p143_p9 = scmp.lt.s32.totalorder %s2401_s14, 3 }
   0xc   : > { %s2474_s22 = scalar_select %p88_p7, %s2389_s11, %s90_s18  }
   0xd   : > { %p144_p10 = pnand %p2119_p6, %p143_p9 }
   0xe   : > { %p172_p11 = scmp.lt.s32.totalorder (!%p144_p10), %s2393_s12, 1  ;;  %s169_s4 = sand.u32 (!%p144_p10), 1, %s2385_s10  }
   0xf   : > { %147 = sbr.rel (%p144_p10) target bundleno = 333 (0x14d), region = 28  ;;  %s2120_s5 = sshll.u32 (!%p144_p10), %s169_s4, 8 }
  0x10   : > { %s2603_s6 = scalar_lea.vmem (!%p144_p10), [#allocation2], %s2120_s5  ;;  %s2264_s18 = sshll.u32 (!%p144_p10), %s2393_s12, 12 }
  0x11   : > { %s2021_s20 = sshll.u32 (!%p144_p10), %s2603_s6, 4  ;;  %s3707_s25 = scalar_lea.hbm (!%p144_p10), %s3761_s2, %s2264_s18  ;;  %s3709_s20 = int_to_ptr.vmem [resolvable:$true] %s2021_s20 }
  0x12   : > { %s2403_s27 = smov (!%p144_p10), [#allocation2]  }
  0x13   : > { %s2329_s28 = sshll.u32 (!%p144_p10), %s2403_s27, 4  ;;  %s2330_s28 = int_to_ptr.vmem [resolvable:$false] %s2329_s28 }
  0x14   : > { %v210_v0 = vlaneseq  ;;  %s173_s23 = scalar_select %p172_p11, %s2393_s12, 1  ;;  %v184_v2 = vld [vmem:[%s3760_s1] sm:$0xff]  ;;  %vm282_vm0 = vcmask 1046528   ;;  %vm407_vm1 = vcmask 1045504   ;;  %v2524_v34 = vld [vmem:[%s3760_s1 + $0x8] ss:$0 sm:$0xff] }
  0x15   : > { %s2325_s12 = scalar_lea.vmem %s3709_s20, 4096  ;;  %p2332_p1 = scmp.lt.s32.totalorder %s3709_s20, %s2330_s28 }
  0x16   : > { %v211_v1 = vshrl.u32 %v210_v0, 7  ;;  %s2265_s26 = smul.u32 432, %s173_s23  ;;  %p2326_p12 = scmp.ne.s32.totalorder %s3709_s20, %s2325_s12 }
  0x18   : > { %v212_v3 = vsub.s32 0, %v211_v1  ;;  %v232_v4 = vsub.s32 1, %v211_v1  ;;  %v357_v5 = vsub.s32 2, %v211_v1  ;;  %v507_v6 = vsub.s32 3, %v211_v1  ;;  %s2490_s29 = scalar_lea.vmem %s3759_s0, %s2265_s26  ;;  %s3714_s26 = scalar_lea.sflag [#allocation3], %s169_s4 }
  0x19   : > { %v543_v7 = vsub.s32 4, %v211_v1  ;;  %v667_v8 = vsub.s32 5, %v211_v1  ;;  %v816_v9 = vsub.s32 6, %v211_v1  ;;  %v852_v10 = vsub.s32 7, %v211_v1  ;;  %v186_v16 = vld [vmem:[%s2490_s29] sm:$0xff]  ;;  %v187_v17 = vld [vmem:[%s2490_s29 + $0x8] sm:$0xff]  ;;  %p2327_p13 = pnand %p2326_p12, %p2461_p4 }
  0x1a   : > { %v2481_v11 = vrot.slane %v184_v2, %v212_v3  ;;  %v2483_v12 = vrot.slane %v184_v2, %v232_v4  ;;  %v2485_v13 = vrot.slane %v184_v2, %v357_v5  ;;  %v2498_v18 = vrot.slane %v184_v2, %v507_v6  ;;  %v2506_v23 = vld [vmem:[%s2490_s29 + $0x18] sm:$0xff]  ;;  %v2509_v24 = vld [vmem:[%s2490_s29 + $0x20] sm:$0xff]  ;;  %v2529_v39 = vld [vmem:[%s2490_s29 + $0x30] sm:$0xff] }
  0x1b   : > { %v2492_v14 = vrot.slane %v184_v2, %v543_v7  ;;  %v2494_v15 = vrot.slane %v184_v2, %v667_v8  ;;  %v2500_v19 = vrot.slane %v184_v2, %v816_v9  ;;  %v2511_v25 = vrot.slane %v184_v2, %v852_v10  ;;  %v188_v44 = vld [vmem:[%s2490_s29 + $0x10] sm:$0x3]  ;;  %v2539_v48 = vld [vmem:[%s2490_s29 + $0x38] sm:$0xff]  ;;  %v2124_v54 = vld [vmem:[%s2490_s29 + $0x28] sm:$0x3]  ;;  %p2328_p0 = pneg %p2327_p13 }
  0x1c   : > { %v234_v20 = vmul.f32 %v2483_v12, %v186_v16  ;;  %v235_v21 = vmul.f32 %v2483_v12, %v187_v17  ;;  %v359_v22 = vmul.f32 %v2485_v13, %v186_v16  ;;  %v214_v26 = vmul.f32 %v2481_v11, %v186_v16  ;;  %v2148_v3 = vld [vmem:[%s2490_s29 + $0x40] sm:$0x3] }
  0x1d   : > { %v360_v27 = vmul.f32 %v2485_v13, %v187_v17  ;;  %v545_v28 = vmul.f32 %v2506_v23, %v2492_v14  ;;  %v546_v29 = vmul.f32 %v2509_v24, %v2492_v14  ;;  %v669_v33 = vmul.f32 %v2506_v23, %v2494_v15 }
  0x1e   : > { %v283_v30 = vrot.slane %v234_v20, 1  ;;  %v284_v31 = vrot.slane %v235_v21, 1  ;;  %v408_v32 = vrot.slane %v359_v22, 2  ;;  %v670_v38 = vmul.f32 %v2509_v24, %v2494_v15 }
  0x1f   : > { %v409_v35 = vrot.slane %v360_v27, 2  ;;  %v593_v36 = vrot.slane %v545_v28, 1  ;;  %v594_v37 = vrot.slane %v546_v29, 1  ;;  %v509_v41 = vmul.f32 %v2506_v23, %v2498_v18 }
  0x20   : > { %v285_v40 = vsel %vm282_vm0, %v283_v30, %v284_v31  ;;  %v717_v42 = vrot.slane %v669_v33, 2  ;;  %v854_v43 = vmul.f32 %v2529_v39, %v2511_v25  ;;  %v718_v47 = vrot.slane %v670_v38, 2 }
  0x21   : > { %v339_v45 = vadd.f32 %v285_v40, %v214_v26  ;;  %v410_v46 = vsel %vm407_vm1, %v408_v32, %v409_v35  ;;  %v818_v49 = vmul.f32 %v2529_v39, %v2500_v19  ;;  %v855_v50 = vmul.f32 %v2539_v48, %v2511_v25 }
  0x22   : > { %v902_v51 = vrot.slane %v854_v43, 1  ;;  %v978_v52 = vmul.f32 %v2524_v34, %v2529_v39  ;;  %v2549_v53 = vmul.f32 %v2524_v34, %v2539_v48  ;;  %v595_v56 = vsel %vm282_vm0, %v593_v36, %v594_v37 }
  0x23   : > { %v464_v55 = vadd.f32 %v410_v46, %v339_v45  ;;  %v215_v57 = vmul.f32 %v2481_v11, %v187_v17  ;;  %v236_v58 = vmul.f32 %v2483_v12, %v188_v44  ;;  %v903_v59 = vrot.slane %v855_v50, 1 }
  0x24   : > { %v1026_v60 = vrot.slane %v978_v52, 2  ;;  %v1027_v61 = vrot.slane %v2549_v53, 2  ;;  %v361_v62 = vmul.f32 %v2485_v13, %v188_v44  ;;  %v719_v0 = vsel %vm407_vm1, %v717_v42, %v718_v47 }
  0x25   : > { %v525_v63 = vadd.f32 %v509_v41, %v464_v55  ;;  %v286_v1 = vrot.slane %v236_v58, 1  ;;  %v547_v2 = vmul.f32 %v2124_v54, %v2492_v14  ;;  %v904_v4 = vsel %vm282_vm0, %v902_v51, %v903_v59 }
  0x26   : > { %v411_v5 = vrot.slane %v361_v62, 2  ;;  %v510_v6 = vmul.f32 %v2509_v24, %v2498_v18  ;;  %v671_v7 = vmul.f32 %v2124_v54, %v2494_v15  ;;  %v1028_v9 = vsel %vm407_vm1, %v1026_v60, %v1027_v61 }
  0x27   : > { %v649_v8 = vadd.f32 %v595_v56, %v525_v63  ;;  %v287_v10 = vsel %vm282_vm0, %v284_v31, %v286_v1  ;;  %v596_v16 = vrot.slane %v547_v2, 1  ;;  %v856_v22 = vmul.f32 %v2148_v3, %v2511_v25  ;;  %v2610_v1 = vld [vmem:[%s2490_s29 + $0x48] sm:$0xff]  ;;  %v2613_v2 = vld [vmem:[%s2490_s29 + $0x50] sm:$0xff] }
  0x28   : > { %v340_v17 = vadd.f32 %v287_v10, %v215_v57  ;;  %v412_v20 = vsel %vm407_vm1, %v409_v35, %v411_v5  ;;  %v720_v21 = vrot.slane %v671_v7, 2  ;;  %v819_v28 = vmul.f32 %v2539_v48, %v2500_v19  ;;  %v191_v10 = vld [vmem:[%s2490_s29 + $0x28] sm:$0x3] }
  0x29   : > { %v773_v26 = vadd.f32 %v719_v0, %v649_v8  ;;  %v597_v27 = vsel %vm282_vm0, %v594_v37, %v596_v16  ;;  %v980_v29 = vmul.f32 %v2524_v34, %v2148_v3  ;;  %v905_v32 = vrot.slane %v856_v22, 1  ;;  %v2127_v22 = vld [vmem:[%s2490_s29 + $0x40] sm:$0x3] }
  0x2a   : > { %v465_v30 = vadd.f32 %v412_v20, %v340_v17  ;;  %v216_v31 = vmul.f32 %v2506_v23, %v2481_v11  ;;  %v237_v33 = vmul.f32 %v2506_v23, %v2483_v12  ;;  %v721_v36 = vsel %vm407_vm1, %v718_v47, %v720_v21 }
  0x2b   : > { %v834_v35 = vadd.f32 %v818_v49, %v773_v26  ;;  %v2582_v37 = vmul.f32 %v2509_v24, %v2483_v12  ;;  %v362_v38 = vmul.f32 %v2506_v23, %v2485_v13  ;;  %v1029_v41 = vrot.slane %v980_v29, 2 }
  0x2c   : > { %v526_v40 = vadd.f32 %v510_v6, %v465_v30  ;;  %v288_v42 = vrot.slane %v237_v33, 1  ;;  %v2588_v43 = vmul.f32 %v2509_v24, %v2485_v13  ;;  %v906_v45 = vsel %vm282_vm0, %v903_v59, %v905_v32  ;;  %v2151_v33 = vld [vmem:[%s2490_s29 + $0x58] sm:$0x3] }
  0x2d   : > { %v958_v44 = vadd.f32 %v904_v4, %v834_v35  ;;  %v289_v46 = vrot.slane %v2582_v37, 1  ;;  %v413_v47 = vrot.slane %v362_v38, 2  ;;  %v511_v51 = vmul.f32 %v2529_v39, %v2498_v18 }
  0x2e   : > { %v650_v49 = vadd.f32 %v597_v27, %v526_v40  ;;  %v414_v50 = vrot.slane %v2588_v43, 2  ;;  %v548_v23 = vmul.f32 %v2529_v39, %v2492_v14  ;;  %v549_v54 = vmul.f32 %v2539_v48, %v2492_v14 }
  0x2f   : > { %v1082_v52 = vadd.f32 %v1028_v9, %v958_v44  ;;  %v290_v53 = vsel %vm282_vm0, %v288_v42, %v289_v46  ;;  %v672_v55 = vmul.f32 %v2529_v39, %v2494_v15  ;;  %v1030_v60 = vsel %vm407_vm1, %v1027_v61, %v1029_v41 }
  0x30   : > { %v774_v56 = vadd.f32 %v721_v36, %v650_v49  ;;  %v341_v57 = vadd.f32 %v290_v53, %v216_v31  ;;  %v415_v58 = vsel %vm407_vm1, %v413_v47, %v414_v50  ;;  %v598_v59 = vrot.slane %v548_v23, 1 }
  0x31   : > { %1098 = vst [vmem:[%s2603_s6] sm:$0xff] %v1082_v52  ;;  %v599_v62 = vrot.slane %v549_v54, 1  ;;  %v673_v63 = vmul.f32 %v2539_v48, %v2494_v15  ;;  %v722_v0 = vrot.slane %v672_v55, 2  ;;  %v857_v5 = vmul.f32 %v2610_v1, %v2511_v25 }
  0x32   : > { %v835_v3 = vadd.f32 %v819_v28, %v774_v56  ;;  %v466_v4 = vadd.f32 %v415_v58, %v341_v57  ;;  %v858_v6 = vmul.f32 %v2613_v2, %v2511_v25  ;;  %v981_v8 = vmul.f32 %v2524_v34, %v2610_v1 }
  0x33   : > { %v600_v61 = vsel %vm282_vm0, %v598_v59, %v599_v62  ;;  %v723_v7 = vrot.slane %v673_v63, 2  ;;  %v2624_v9 = vmul.f32 %v2524_v34, %v2613_v2  ;;  %v907_v20 = vrot.slane %v857_v5, 1 }
  0x34   : > { %v959_v16 = vadd.f32 %v906_v45, %v835_v3  ;;  %v527_v17 = vadd.f32 %v511_v51, %v466_v4  ;;  %v908_v21 = vrot.slane %v858_v6, 1  ;;  %v1031_v27 = vrot.slane %v981_v8, 2 }
  0x35   : > { %v724_v26 = vsel %vm407_vm1, %v722_v0, %v723_v7  ;;  %v1032_v28 = vrot.slane %v2624_v9, 2  ;;  %v820_v32 = vmul.f32 %v2610_v1, %v2500_v19  ;;  %v239_v31 = vmul.f32 %v2483_v12, %v191_v10  ;;  %v2130_v9 = vld [vmem:[%s2490_s29 + $0x58] sm:$0x3] }
  0x36   : > { %v1083_v29 = vadd.f32 %v1030_v60, %v959_v16  ;;  %v651_v30 = vadd.f32 %v600_v61, %v527_v17  ;;  %v909_v35 = vsel %vm282_vm0, %v907_v20, %v908_v21  ;;  %v217_v36 = vmul.f32 %v2509_v24, %v2481_v11 }
  0x37   : > { %v364_v37 = vmul.f32 %v2485_v13, %v191_v10  ;;  %v550_v38 = vmul.f32 %v2127_v22, %v2492_v14  ;;  %v1033_v41 = vsel %vm407_vm1, %v1031_v27, %v1032_v28  ;;  %v291_v42 = vrot.slane %v239_v31, 1  ;;  %v2682_v31 = vld [vmem:[%s2490_s29 + $0x60] sm:$0xff] }
  0x38   : > { %1099 = vst [vmem:[%s2603_s6 + $0x8] sm:$0xff] %v1083_v29  ;;  %v775_v40 = vadd.f32 %v724_v26, %v651_v30  ;;  %v674_v43 = vmul.f32 %v2127_v22, %v2494_v15  ;;  %v512_v45 = vmul.f32 %v2539_v48, %v2498_v18  ;;  %v859_v24 = vmul.f32 %v2151_v33, %v2511_v25 }
  0x39   : > { %v416_v44 = vrot.slane %v364_v37, 2  ;;  %v601_v47 = vrot.slane %v550_v38, 1  ;;  %v292_v51 = vsel %vm282_vm0, %v289_v46, %v291_v42  ;;  %v983_v52 = vmul.f32 %v2524_v34, %v2151_v33  ;;  %v2685_v37 = vld [vmem:[%s2490_s29 + $0x68] sm:$0xff] }
  0x3a   : > { %v836_v49 = vadd.f32 %v820_v32, %v775_v40  ;;  %v725_v23 = vrot.slane %v674_v43, 2  ;;  %v342_v53 = vadd.f32 %v292_v51, %v217_v36  ;;  %v821_v55 = vmul.f32 %v2613_v2, %v2500_v19 }
  0x3b   : > { %v417_v54 = vsel %vm407_vm1, %v414_v50, %v416_v44  ;;  %v910_v56 = vrot.slane %v859_v24, 1  ;;  %v602_v58 = vsel %vm282_vm0, %v599_v62, %v601_v47  ;;  %v218_v59 = vmul.f32 %v2529_v39, %v2481_v11  ;;  %v194_v44 = vld [vmem:[%s2490_s29 + $0x40] sm:$0x3] }
  0x3c   : > { %v960_v57 = vadd.f32 %v909_v35, %v836_v49  ;;  %v240_v46 = vmul.f32 %v2529_v39, %v2483_v12  ;;  %v467_v60 = vadd.f32 %v417_v54, %v342_v53  ;;  %v726_v63 = vsel %vm407_vm1, %v723_v7, %v725_v23 }
  0x3d   : > { %v2660_v50 = vmul.f32 %v2539_v48, %v2483_v12  ;;  %v365_v0 = vmul.f32 %v2529_v39, %v2485_v13  ;;  %v1034_v4 = vrot.slane %v983_v52, 2  ;;  %v366_v62 = vmul.f32 %v2539_v48, %v2485_v13 }
  0x3e   : > { %v1084_v3 = vadd.f32 %v1033_v41, %v960_v57  ;;  %v293_v5 = vrot.slane %v240_v46, 1  ;;  %v528_v6 = vadd.f32 %v512_v45, %v467_v60  ;;  %v911_v61 = vsel %vm282_vm0, %v908_v21, %v910_v56  ;;  %v2154_v60 = vld [vmem:[%s2490_s29 + $0x70] sm:$0x3] }
  0x3f   : > { %v294_v8 = vrot.slane %v2660_v50, 1  ;;  %v418_v7 = vrot.slane %v365_v0, 2  ;;  %v419_v10 = vrot.slane %v366_v62, 2  ;;  %v551_v16 = vmul.f32 %v2610_v1, %v2492_v14 }
  0x40   : > { %1100 = vst [vmem:[%s2603_s6 + $0x10] sm:$0xff] %v1084_v3  ;;  %v552_v39 = vmul.f32 %v2613_v2, %v2492_v14  ;;  %v675_v17 = vmul.f32 %v2610_v1, %v2494_v15  ;;  %v652_v20 = vadd.f32 %v602_v58, %v528_v6  ;;  %v513_v21 = vmul.f32 %v2610_v1, %v2498_v18 }
  0x41   : > { %v295_v22 = vsel %vm282_vm0, %v293_v5, %v294_v8  ;;  %v676_v26 = vmul.f32 %v2613_v2, %v2494_v15  ;;  %v420_v29 = vsel %vm407_vm1, %v418_v7, %v419_v10  ;;  %v603_v30 = vrot.slane %v551_v16, 1 }
  0x42   : > { %v343_v27 = vadd.f32 %v295_v22, %v218_v59  ;;  %v604_v32 = vrot.slane %v552_v39, 1  ;;  %v776_v33 = vadd.f32 %v726_v63, %v652_v20  ;;  %v727_v35 = vrot.slane %v675_v17, 2 }
  0x43   : > { %v728_v36 = vrot.slane %v676_v26, 2  ;;  %v860_v38 = vmul.f32 %v2682_v31, %v2511_v25  ;;  %v1035_v40 = vsel %vm407_vm1, %v1032_v28, %v1034_v4  ;;  %v2694_v42 = vmul.f32 %v2685_v37, %v2511_v25 }
  0x44   : > { %v468_v41 = vadd.f32 %v420_v29, %v343_v27  ;;  %v984_v43 = vmul.f32 %v2524_v34, %v2682_v31  ;;  %v837_v45 = vadd.f32 %v821_v55, %v776_v33  ;;  %v605_v47 = vsel %vm282_vm0, %v603_v30, %v604_v32 }
  0x45   : > { %v912_v24 = vrot.slane %v860_v38, 1  ;;  %v2702_v49 = vmul.f32 %v2524_v34, %v2685_v37  ;;  %v729_v51 = vsel %vm407_vm1, %v727_v35, %v728_v36  ;;  %v822_v23 = vmul.f32 %v2682_v31, %v2500_v19 }
  0x46   : > { %v529_v28 = vadd.f32 %v513_v21, %v468_v41  ;;  %v913_v52 = vrot.slane %v2694_v42, 1  ;;  %v961_v53 = vadd.f32 %v911_v61, %v837_v45  ;;  %v1036_v54 = vrot.slane %v984_v43, 2 }
  0x47   : > { %v242_v55 = vmul.f32 %v2483_v12, %v194_v44  ;;  %v367_v56 = vmul.f32 %v2485_v13, %v194_v44  ;;  %v1037_v58 = vrot.slane %v2702_v49, 2  ;;  %v219_v59 = vmul.f32 %v2539_v48, %v2481_v11 }
  0x48   : > { %v653_v57 = vadd.f32 %v605_v47, %v529_v28  ;;  %v553_v46 = vmul.f32 %v2130_v9, %v2492_v14  ;;  %v1085_v63 = vadd.f32 %v1035_v40, %v961_v53  ;;  %v914_v50 = vsel %vm282_vm0, %v912_v24, %v913_v52 }
  0x49   : > { %v296_v0 = vrot.slane %v242_v55, 1  ;;  %v421_v3 = vrot.slane %v367_v56, 2  ;;  %v514_v5 = vmul.f32 %v2613_v2, %v2498_v18  ;;  %v677_v6 = vmul.f32 %v2130_v9, %v2494_v15 }
  0x4a   : > { %v777_v4 = vadd.f32 %v729_v51, %v653_v57  ;;  %v606_v62 = vrot.slane %v553_v46, 1  ;;  %1101 = vst [vmem:[%s2603_s6 + $0x18] sm:$0xff] %v1085_v63  ;;  %v862_v7 = vmul.f32 %v2154_v60, %v2511_v25  ;;  %v986_v16 = vmul.f32 %v2524_v34, %v2154_v60  ;;  %v2760_v60 = vld [vmem:[%s2490_s29 + $0x78] sm:$0xff] }
  0x4b   : > { %v297_v61 = vsel %vm282_vm0, %v294_v8, %v296_v0  ;;  %v422_v48 = vsel %vm407_vm1, %v419_v10, %v421_v3  ;;  %v1038_v17 = vsel %vm407_vm1, %v1036_v54, %v1037_v58  ;;  %v730_v22 = vrot.slane %v677_v6, 2  ;;  %v2764_v3 = vld [vmem:[%s2490_s29 + $0x80] sm:$0xff] }
  0x4c   : > { %v838_v39 = vadd.f32 %v822_v23, %v777_v4  ;;  %v344_v20 = vadd.f32 %v297_v61, %v219_v59  ;;  %v607_v21 = vsel %vm282_vm0, %v604_v32, %v606_v62  ;;  %v823_v26 = vmul.f32 %v2685_v37, %v2500_v19  ;;  %v197_v61 = vld [vmem:[%s2490_s29 + $0x58] sm:$0x3] }
  0x4d   : > { %v915_v27 = vrot.slane %v862_v7, 1  ;;  %v243_v8 = vmul.f32 %v2610_v1, %v2483_v12  ;;  %v1039_v30 = vrot.slane %v986_v16, 2  ;;  %v2735_v33 = vmul.f32 %v2613_v2, %v2483_v12 }
  0x4e   : > { %v962_v10 = vadd.f32 %v914_v50, %v838_v39  ;;  %v469_v29 = vadd.f32 %v422_v48, %v344_v20  ;;  %v731_v35 = vsel %vm407_vm1, %v728_v36, %v730_v22  ;;  %v220_v32 = vmul.f32 %v2610_v1, %v2481_v11 }
  0x4f   : > { %v298_v38 = vrot.slane %v243_v8, 1  ;;  %v368_v40 = vmul.f32 %v2610_v1, %v2485_v13  ;;  %v299_v43 = vrot.slane %v2735_v33, 1  ;;  %v369_v44 = vmul.f32 %v2613_v2, %v2485_v13 }
  0x50   : > { %v1086_v41 = vadd.f32 %v1038_v17, %v962_v10  ;;  %v530_v42 = vadd.f32 %v514_v5, %v469_v29  ;;  %v515_v47 = vmul.f32 %v2682_v31, %v2498_v18  ;;  %v554_v36 = vmul.f32 %v2682_v31, %v2492_v14  ;;  %v2133_v17 = vld [vmem:[%s2490_s29 + $0x70] sm:$0x3]  ;;  %v2157_v10 = vld [vmem:[%s2490_s29 + $0x88] sm:$0x3] }
  0x51   : > { %v423_v45 = vrot.slane %v368_v40, 2  ;;  %v555_v24 = vmul.f32 %v2685_v37, %v2492_v14  ;;  %v300_v9 = vsel %vm282_vm0, %v298_v38, %v299_v43  ;;  %v424_v28 = vrot.slane %v369_v44, 2 }
  0x52   : > { %1102 = vst [vmem:[%s2603_s6 + $0x20] sm:$0xff] %v1086_v41  ;;  %v654_v1 = vadd.f32 %v607_v21, %v530_v42  ;;  %v678_v51 = vmul.f32 %v2682_v31, %v2494_v15  ;;  %v345_v23 = vadd.f32 %v300_v9, %v220_v32  ;;  %v608_v53 = vrot.slane %v554_v36, 1 }
  0x53   : > { %v609_v54 = vrot.slane %v555_v24, 1  ;;  %v679_v55 = vmul.f32 %v2685_v37, %v2494_v15  ;;  %v916_v57 = vsel %vm282_vm0, %v913_v52, %v915_v27  ;;  %v425_v59 = vsel %vm407_vm1, %v423_v45, %v424_v28 }
  0x54   : > { %v778_v56 = vadd.f32 %v731_v35, %v654_v1  ;;  %v732_v46 = vrot.slane %v678_v51, 2  ;;  %v470_v63 = vadd.f32 %v425_v59, %v345_v23  ;;  %v863_v4 = vmul.f32 %v2760_v60, %v2511_v25 }
  0x55   : > { %v610_v50 = vsel %vm282_vm0, %v608_v53, %v609_v54  ;;  %v733_v0 = vrot.slane %v679_v55, 2  ;;  %v2770_v62 = vmul.f32 %v2764_v3, %v2511_v25  ;;  %v987_v52 = vmul.f32 %v2524_v34, %v2760_v60 }
  0x56   : > { %v839_v5 = vadd.f32 %v823_v26, %v778_v56  ;;  %v2776_v6 = vmul.f32 %v2524_v34, %v2764_v3  ;;  %v1040_v48 = vsel %vm407_vm1, %v1037_v58, %v1039_v30  ;;  %v531_v7 = vadd.f32 %v515_v47, %v470_v63 }
  0x57   : > { %v734_v16 = vsel %vm407_vm1, %v732_v46, %v733_v0  ;;  %v824_v39 = vmul.f32 %v2760_v60, %v2500_v19  ;;  %v917_v22 = vrot.slane %v863_v4, 1  ;;  %v918_v21 = vrot.slane %v2770_v62, 1 }
  0x58   : > { %v963_v20 = vadd.f32 %v916_v57, %v839_v5  ;;  %v221_v26 = vmul.f32 %v2613_v2, %v2481_v11  ;;  %v655_v27 = vadd.f32 %v610_v50, %v531_v7  ;;  %v1041_v8 = vrot.slane %v987_v52, 2 }
  0x59   : > { %v245_v49 = vmul.f32 %v2483_v12, %v197_v61  ;;  %v370_v58 = vmul.f32 %v2485_v13, %v197_v61  ;;  %v1042_v30 = vrot.slane %v2776_v6, 2  ;;  %v516_v33 = vmul.f32 %v2685_v37, %v2498_v18 }
  0x5a   : > { %v1087_v29 = vadd.f32 %v1040_v48, %v963_v20  ;;  %v556_v35 = vmul.f32 %v2133_v17, %v2492_v14  ;;  %v779_v32 = vadd.f32 %v734_v16, %v655_v27  ;;  %v680_v2 = vmul.f32 %v2133_v17, %v2494_v15 }
  0x5b   : > { %v301_v38 = vrot.slane %v245_v49, 1  ;;  %v426_v40 = vrot.slane %v370_v58, 2  ;;  %v919_v41 = vsel %vm282_vm0, %v917_v22, %v918_v21  ;;  %v865_v44 = vmul.f32 %v2157_v10, %v2511_v25  ;;  %v2832_v49 = vld [vmem:[%s2490_s29 + $0x90] sm:$0xff] }
  0x5c   : > { %1103 = vst [vmem:[%s2603_s6 + $0x28] sm:$0xff] %v1087_v29  ;;  %v611_v42 = vrot.slane %v556_v35, 1  ;;  %v989_v45 = vmul.f32 %v2524_v34, %v2157_v10  ;;  %v840_v47 = vadd.f32 %v824_v39, %v779_v32  ;;  %v735_v1 = vrot.slane %v680_v2, 2 }
  0x5d   : > { %v302_v36 = vsel %vm282_vm0, %v299_v43, %v301_v38  ;;  %v427_v24 = vsel %vm407_vm1, %v424_v28, %v426_v40  ;;  %v1043_v9 = vsel %vm407_vm1, %v1041_v8, %v1042_v30  ;;  %v825_v53 = vmul.f32 %v2764_v3, %v2500_v19 }
  0x5e   : > { %v346_v51 = vadd.f32 %v302_v36, %v221_v26  ;;  %v612_v23 = vsel %vm282_vm0, %v609_v54, %v611_v42  ;;  %v964_v55 = vadd.f32 %v919_v41, %v840_v47  ;;  %v920_v56 = vrot.slane %v865_v44, 1  ;;  %v200_v41 = vld [vmem:[%s2490_s29 + $0x70] sm:$0x3]  ;;  %v2136_v47 = vld [vmem:[%s2490_s29 + $0x88] sm:$0x3] }
  0x5f   : > { %v1044_v57 = vrot.slane %v989_v45, 2  ;;  %v246_v59 = vmul.f32 %v2682_v31, %v2483_v12  ;;  %v736_v43 = vsel %vm407_vm1, %v733_v0, %v735_v1  ;;  %v222_v28 = vmul.f32 %v2682_v31, %v2481_v11 }
  0x60   : > { %v471_v46 = vadd.f32 %v427_v24, %v346_v51  ;;  %v247_v63 = vmul.f32 %v2685_v37, %v2483_v12  ;;  %v1088_v54 = vadd.f32 %v1043_v9, %v964_v55  ;;  %v371_v4 = vmul.f32 %v2682_v31, %v2485_v13 }
  0x61   : > { %v303_v50 = vrot.slane %v246_v59, 1  ;;  %v372_v5 = vmul.f32 %v2685_v37, %v2485_v13  ;;  %v517_v0 = vmul.f32 %v2760_v60, %v2498_v18  ;;  %v557_v6 = vmul.f32 %v2760_v60, %v2492_v14 }
  0x62   : > { %v532_v62 = vadd.f32 %v516_v33, %v471_v46  ;;  %v304_v52 = vrot.slane %v247_v63, 1  ;;  %1104 = vst [vmem:[%s2603_s6 + $0x30] sm:$0xff] %v1088_v54  ;;  %v428_v61 = vrot.slane %v371_v4, 2  ;;  %v558_v7 = vmul.f32 %v2764_v3, %v2492_v14  ;;  %v2836_v33 = vld [vmem:[%s2490_s29 + $0x98] sm:$0xff]  ;;  %v2160_v46 = vld [vmem:[%s2490_s29 + $0xa0] sm:$0x3] }
  0x63   : > { %v429_v48 = vrot.slane %v372_v5, 2  ;;  %v681_v31 = vmul.f32 %v2760_v60, %v2494_v15  ;;  %v613_v17 = vrot.slane %v557_v6, 1  ;;  %v682_v20 = vmul.f32 %v2764_v3, %v2494_v15 }
  0x64   : > { %v656_v16 = vadd.f32 %v612_v23, %v532_v62  ;;  %v305_v39 = vsel %vm282_vm0, %v303_v50, %v304_v52  ;;  %v614_v27 = vrot.slane %v558_v7, 1  ;;  %v921_v10 = vsel %vm282_vm0, %v918_v21, %v920_v56 }
  0x65   : > { %v347_v22 = vadd.f32 %v305_v39, %v222_v28  ;;  %v430_v26 = vsel %vm407_vm1, %v428_v61, %v429_v48  ;;  %v737_v8 = vrot.slane %v681_v31, 2  ;;  %v738_v29 = vrot.slane %v682_v20, 2 }
  0x66   : > { %v780_v58 = vadd.f32 %v736_v43, %v656_v16  ;;  %v866_v35 = vmul.f32 %v2832_v49, %v2511_v25  ;;  %v1045_v32 = vsel %vm407_vm1, %v1042_v30, %v1044_v57  ;;  %v2843_v40 = vmul.f32 %v2836_v33, %v2511_v25 }
  0x67   : > { %v472_v38 = vadd.f32 %v430_v26, %v347_v22  ;;  %v990_v2 = vmul.f32 %v2524_v34, %v2832_v49  ;;  %v615_v21 = vsel %vm282_vm0, %v613_v17, %v614_v27  ;;  %v2851_v45 = vmul.f32 %v2524_v34, %v2836_v33 }
  0x68   : > { %v841_v42 = vadd.f32 %v825_v53, %v780_v58  ;;  %v922_v44 = vrot.slane %v866_v35, 1  ;;  %v739_v36 = vsel %vm407_vm1, %v737_v8, %v738_v29  ;;  %v826_v24 = vmul.f32 %v2832_v49, %v2500_v19 }
  0x69   : > { %v533_v30 = vadd.f32 %v517_v0, %v472_v38  ;;  %v923_v1 = vrot.slane %v2843_v40, 1  ;;  %v1046_v51 = vrot.slane %v990_v2, 2  ;;  %v248_v23 = vmul.f32 %v2483_v12, %v200_v41 }
  0x6a   : > { %v965_v9 = vadd.f32 %v921_v10, %v841_v42  ;;  %v373_v53 = vmul.f32 %v2485_v13, %v200_v41  ;;  %v1047_v56 = vrot.slane %v2851_v45, 2  ;;  %v223_v57 = vmul.f32 %v2685_v37, %v2481_v11 }
  0x6b   : > { %v657_v55 = vadd.f32 %v615_v21, %v533_v30  ;;  %v559_v59 = vmul.f32 %v2136_v47, %v2492_v14  ;;  %v924_v28 = vsel %vm282_vm0, %v922_v44, %v923_v1  ;;  %v306_v63 = vrot.slane %v248_v23, 1 }
  0x6c   : > { %v1089_v43 = vadd.f32 %v1045_v32, %v965_v9  ;;  %v431_v54 = vrot.slane %v373_v53, 2  ;;  %v518_v4 = vmul.f32 %v2764_v3, %v2498_v18  ;;  %v683_v62 = vmul.f32 %v2136_v47, %v2494_v15 }
  0x6d   : > { %v781_v50 = vadd.f32 %v739_v36, %v657_v55  ;;  %v616_v5 = vrot.slane %v559_v59, 1  ;;  %v307_v0 = vsel %vm282_vm0, %v304_v52, %v306_v63  ;;  %v868_v6 = vmul.f32 %v2160_v46, %v2511_v25 }
  0x6e   : > { %1105 = vst [vmem:[%s2603_s6 + $0x38] sm:$0xff] %v1089_v43  ;;  %v432_v37 = vsel %vm407_vm1, %v429_v48, %v431_v54  ;;  %v992_v61 = vmul.f32 %v2524_v34, %v2160_v46  ;;  %v1048_v31 = vsel %vm407_vm1, %v1046_v51, %v1047_v56  ;;  %v348_v16 = vadd.f32 %v307_v0, %v223_v57  ;;  %v2909_v46 = vld [vmem:[%s2490_s29 + $0xa8] sm:$0xff]  ;;  %v2913_v54 = vld [vmem:[%s2490_s29 + $0xb0] sm:$0xff] }
  0x6f   : > { %v842_v7 = vadd.f32 %v826_v24, %v781_v50  ;;  %v740_v39 = vrot.slane %v683_v62, 2  ;;  %v617_v17 = vsel %vm282_vm0, %v614_v27, %v616_v5  ;;  %v827_v20 = vmul.f32 %v2836_v33, %v2500_v19  ;;  %v203_v0 = vld [vmem:[%s2490_s29 + $0x88] sm:$0x3] }
  0x70   : > { %v925_v22 = vrot.slane %v868_v6, 1  ;;  %v249_v52 = vmul.f32 %v2760_v60, %v2483_v12  ;;  %v473_v26 = vadd.f32 %v432_v37, %v348_v16  ;;  %v1049_v8 = vrot.slane %v992_v61, 2 }
  0x71   : > { %v966_v48 = vadd.f32 %v924_v28, %v842_v7  ;;  %v2884_v58 = vmul.f32 %v2764_v3, %v2483_v12  ;;  %v741_v10 = vsel %vm407_vm1, %v738_v29, %v740_v39  ;;  %v224_v27 = vmul.f32 %v2760_v60, %v2481_v11 }
  0x72   : > { %v308_v35 = vrot.slane %v249_v52, 1  ;;  %v374_v32 = vmul.f32 %v2760_v60, %v2485_v13  ;;  %v534_v40 = vadd.f32 %v518_v4, %v473_v26  ;;  %v375_v41 = vmul.f32 %v2764_v3, %v2485_v13 }
  0x73   : > { %v1090_v38 = vadd.f32 %v1048_v31, %v966_v48  ;;  %v309_v2 = vrot.slane %v2884_v58, 1  ;;  %v519_v21 = vmul.f32 %v2832_v49, %v2498_v18  ;;  %v560_v29 = vmul.f32 %v2832_v49, %v2492_v14  ;;  %v2139_v31 = vld [vmem:[%s2490_s29 + $0xa0] sm:$0x3]  ;;  %v2163_v48 = vld [vmem:[%s2490_s29 + $0xb8] sm:$0x3] }
  0x74   : > { %v433_v42 = vrot.slane %v374_v32, 2  ;;  %v561_v44 = vmul.f32 %v2836_v33, %v2492_v14  ;;  %v658_v60 = vadd.f32 %v617_v17, %v534_v40  ;;  %v434_v30 = vrot.slane %v375_v41, 2 }
  0x75   : > { %1106 = vst [vmem:[%s2603_s6 + $0x40] sm:$0xff] %v1090_v38  ;;  %v310_v47 = vsel %vm282_vm0, %v308_v35, %v309_v2  ;;  %v684_v36 = vmul.f32 %v2832_v49, %v2494_v15  ;;  %v618_v9 = vrot.slane %v560_v29, 1  ;;  %v685_v23 = vmul.f32 %v2836_v33, %v2494_v15 }
  0x76   : > { %v349_v24 = vadd.f32 %v310_v47, %v224_v27  ;;  %v619_v51 = vrot.slane %v561_v44, 1  ;;  %v782_v53 = vadd.f32 %v741_v10, %v658_v60  ;;  %v926_v55 = vsel %vm282_vm0, %v923_v1, %v925_v22 }
  0x77   : > { %v435_v57 = vsel %vm407_vm1, %v433_v42, %v434_v30  ;;  %v742_v59 = vrot.slane %v684_v36, 2  ;;  %v743_v63 = vrot.slane %v685_v23, 2  ;;  %v869_v50 = vmul.f32 %v2909_v46, %v2511_v25 }
  0x78   : > { %v474_v43 = vadd.f32 %v435_v57, %v349_v24  ;;  %v620_v28 = vsel %vm282_vm0, %v618_v9, %v619_v51  ;;  %v843_v4 = vadd.f32 %v827_v20, %v782_v53  ;;  %v2919_v5 = vmul.f32 %v2913_v54, %v2511_v25 }
  0x79   : > { %v993_v1 = vmul.f32 %v2524_v34, %v2909_v46  ;;  %v2925_v62 = vmul.f32 %v2524_v34, %v2913_v54  ;;  %v1050_v37 = vsel %vm407_vm1, %v1047_v56, %v1049_v8  ;;  %v744_v61 = vsel %vm407_vm1, %v742_v59, %v743_v63 }
  0x7a   : > { %v535_v6 = vadd.f32 %v519_v21, %v474_v43  ;;  %v828_v7 = vmul.f32 %v2909_v46, %v2500_v19  ;;  %v967_v16 = vadd.f32 %v926_v55, %v843_v4  ;;  %v927_v39 = vrot.slane %v869_v50, 1 }
  0x7b   : > { %v928_v17 = vrot.slane %v2919_v5, 1  ;;  %v225_v20 = vmul.f32 %v2764_v3, %v2481_v11  ;;  %v1051_v52 = vrot.slane %v993_v1, 2  ;;  %v251_v45 = vmul.f32 %v2483_v12, %v203_v0 }
  0x7c   : > { %v659_v22 = vadd.f32 %v620_v28, %v535_v6  ;;  %v376_v56 = vmul.f32 %v2485_v13, %v203_v0  ;;  %v1091_v26 = vadd.f32 %v1050_v37, %v967_v16  ;;  %v1052_v8 = vrot.slane %v2925_v62, 2 }
  0x7d   : > { %v520_v58 = vmul.f32 %v2836_v33, %v2498_v18  ;;  %v562_v10 = vmul.f32 %v2139_v31, %v2492_v14  ;;  %v311_v35 = vrot.slane %v251_v45, 1  ;;  %v686_v3 = vmul.f32 %v2139_v31, %v2494_v15  ;;  %v2981_v45 = vld [vmem:[%s2490_s29 + $0xc0] sm:$0xff] }
  0x7e   : > { %v783_v27 = vadd.f32 %v744_v61, %v659_v22  ;;  %v436_v32 = vrot.slane %v376_v56, 2  ;;  %1107 = vst [vmem:[%s2603_s6 + $0x48] sm:$0xff] %v1091_v26  ;;  %v929_v38 = vsel %vm282_vm0, %v927_v39, %v928_v17  ;;  %v871_v41 = vmul.f32 %v2163_v48, %v2511_v25 }
  0x7f   : > { %v621_v40 = vrot.slane %v562_v10, 1  ;;  %v995_v42 = vmul.f32 %v2524_v34, %v2163_v48  ;;  %v312_v29 = vsel %vm282_vm0, %v309_v2, %v311_v35  ;;  %v745_v60 = vrot.slane %v686_v3, 2 }
  0x80   : > { %v844_v21 = vadd.f32 %v828_v7, %v783_v27  ;;  %v437_v44 = vsel %vm407_vm1, %v434_v30, %v436_v32  ;;  %v1053_v47 = vsel %vm407_vm1, %v1051_v52, %v1052_v8  ;;  %v350_v36 = vadd.f32 %v312_v29, %v225_v20 }
  0x81   : > { %v622_v24 = vsel %vm282_vm0, %v619_v51, %v621_v40  ;;  %v829_v9 = vmul.f32 %v2913_v54, %v2500_v19  ;;  %v930_v53 = vrot.slane %v871_v41, 1  ;;  %v1054_v55 = vrot.slane %v995_v42, 2 }
  0x82   : > { %v968_v23 = vadd.f32 %v929_v38, %v844_v21  ;;  %v252_v57 = vmul.f32 %v2832_v49, %v2483_v12  ;;  %v475_v59 = vadd.f32 %v437_v44, %v350_v36  ;;  %v746_v2 = vsel %vm407_vm1, %v743_v63, %v745_v60  ;;  %v206_v38 = vld [vmem:[%s2490_s29 + $0xa0] sm:$0x3]  ;;  %v2142_v21 = vld [vmem:[%s2490_s29 + $0xb8] sm:$0x3] }
  0x83   : > { %v226_v30 = vmul.f32 %v2832_v49, %v2481_v11  ;;  %v253_v43 = vmul.f32 %v2836_v33, %v2483_v12  ;;  %v377_v50 = vmul.f32 %v2832_v49, %v2485_v13  ;;  %v378_v4 = vmul.f32 %v2836_v33, %v2485_v13 }
  0x84   : > { %v1092_v51 = vadd.f32 %v1053_v47, %v968_v23  ;;  %v313_v28 = vrot.slane %v252_v57, 1  ;;  %v536_v5 = vadd.f32 %v520_v58, %v475_v59  ;;  %v521_v63 = vmul.f32 %v2909_v46, %v2498_v18  ;;  %v2985_v58 = vld [vmem:[%s2490_s29 + $0xc8] sm:$0xff]  ;;  %v2166_v59 = vld [vmem:[%s2490_s29 + $0xd0] sm:$0x3] }
  0x85   : > { %v314_v1 = vrot.slane %v253_v43, 1  ;;  %v563_v62 = vmul.f32 %v2909_v46, %v2492_v14  ;;  %v438_v0 = vrot.slane %v377_v50, 2  ;;  %v439_v37 = vrot.slane %v378_v4, 2 }
  0x86   : > { %1108 = vst [vmem:[%s2603_s6 + $0x50] sm:$0xff] %v1092_v51  ;;  %v564_v6 = vmul.f32 %v2913_v54, %v2492_v14  ;;  %v687_v49 = vmul.f32 %v2909_v46, %v2494_v15  ;;  %v660_v61 = vadd.f32 %v622_v24, %v536_v5  ;;  %v688_v16 = vmul.f32 %v2913_v54, %v2494_v15 }
  0x87   : > { %v315_v7 = vsel %vm282_vm0, %v313_v28, %v314_v1  ;;  %v623_v31 = vrot.slane %v563_v62, 1  ;;  %v440_v20 = vsel %vm407_vm1, %v438_v0, %v439_v37  ;;  %v931_v48 = vsel %vm282_vm0, %v928_v17, %v930_v53 }
  0x88   : > { %v351_v39 = vadd.f32 %v315_v7, %v226_v30  ;;  %v624_v22 = vrot.slane %v564_v6, 1  ;;  %v747_v52 = vrot.slane %v687_v49, 2  ;;  %v784_v56 = vadd.f32 %v746_v2, %v660_v61 }
  0x89   : > { %v748_v26 = vrot.slane %v688_v16, 2  ;;  %v872_v10 = vmul.f32 %v2981_v45, %v2511_v25  ;;  %v1055_v27 = vsel %vm407_vm1, %v1052_v8, %v1054_v55  ;;  %v2992_v32 = vmul.f32 %v2985_v58, %v2511_v25 }
  0x8a   : > { %v476_v35 = vadd.f32 %v440_v20, %v351_v39  ;;  %v996_v3 = vmul.f32 %v2524_v34, %v2981_v45  ;;  %v845_v40 = vadd.f32 %v829_v9, %v784_v56  ;;  %v625_v17 = vsel %vm282_vm0, %v623_v31, %v624_v22 }
  0x8b   : > { %v932_v41 = vrot.slane %v872_v10, 1  ;;  %v3000_v42 = vmul.f32 %v2524_v34, %v2985_v58  ;;  %v749_v29 = vsel %vm407_vm1, %v747_v52, %v748_v26  ;;  %v830_v44 = vmul.f32 %v2981_v45, %v2500_v19 }
  0x8c   : > { %v537_v8 = vadd.f32 %v521_v63, %v476_v35  ;;  %v933_v60 = vrot.slane %v2992_v32, 1  ;;  %v969_v47 = vadd.f32 %v931_v48, %v845_v40  ;;  %v1056_v36 = vrot.slane %v996_v3, 2 }
  0x8d   : > { %v254_v24 = vmul.f32 %v2483_v12, %v206_v38  ;;  %v379_v9 = vmul.f32 %v2485_v13, %v206_v38  ;;  %v1057_v53 = vrot.slane %v3000_v42, 2  ;;  %v227_v55 = vmul.f32 %v2836_v33, %v2481_v11 }
  0x8e   : > { %v661_v23 = vadd.f32 %v625_v17, %v537_v8  ;;  %v565_v57 = vmul.f32 %v2142_v21, %v2492_v14  ;;  %v1093_v2 = vadd.f32 %v1055_v27, %v969_v47  ;;  %v934_v30 = vsel %vm282_vm0, %v932_v41, %v933_v60 }
  0x8f   : > { %v316_v43 = vrot.slane %v254_v24, 1  ;;  %v441_v51 = vrot.slane %v379_v9, 2  ;;  %v522_v50 = vmul.f32 %v2913_v54, %v2498_v18  ;;  %v689_v5 = vmul.f32 %v2142_v21, %v2494_v15 }
  0x90   : > { %v785_v28 = vadd.f32 %v749_v29, %v661_v23  ;;  %v626_v4 = vrot.slane %v565_v57, 1  ;;  %1109 = vst [vmem:[%s2603_s6 + $0x58] sm:$0xff] %v1093_v2  ;;  %v874_v62 = vmul.f32 %v2166_v59, %v2511_v25  ;;  %v998_v0 = vmul.f32 %v2524_v34, %v2166_v59  ;;  %v3058_v57 = vld [vmem:[%s2490_s29 + $0xd8] sm:$0xff] }
  0x91   : > { %v317_v63 = vsel %vm282_vm0, %v314_v1, %v316_v43  ;;  %v442_v33 = vsel %vm407_vm1, %v439_v37, %v441_v51  ;;  %v1058_v49 = vsel %vm407_vm1, %v1056_v36, %v1057_v53  ;;  %v750_v7 = vrot.slane %v689_v5, 2  ;;  %v3062_v43 = vld [vmem:[%s2490_s29 + $0xe0] sm:$0xff] }
  0x92   : > { %v846_v6 = vadd.f32 %v830_v44, %v785_v28  ;;  %v352_v61 = vadd.f32 %v317_v63, %v227_v55  ;;  %v627_v31 = vsel %vm282_vm0, %v624_v22, %v626_v4  ;;  %v831_v16 = vmul.f32 %v2985_v58, %v2500_v19  ;;  %v209_v63 = vld [vmem:[%s2490_s29 + $0xb8] sm:$0x3] }
  0x93   : > { %v935_v39 = vrot.slane %v874_v62, 1  ;;  %v255_v1 = vmul.f32 %v2909_v46, %v2483_v12  ;;  %v1059_v34 = vrot.slane %v998_v0, 2  ;;  %v3033_v52 = vmul.f32 %v2913_v54, %v2483_v12 }
  0x94   : > { %v970_v37 = vadd.f32 %v934_v30, %v846_v6  ;;  %v477_v20 = vadd.f32 %v442_v33, %v352_v61  ;;  %v751_v56 = vsel %vm407_vm1, %v748_v26, %v750_v7  ;;  %v228_v22 = vmul.f32 %v2909_v46, %v2481_v11 }
  0x95   : > { %v318_v48 = vrot.slane %v255_v1, 1  ;;  %v380_v10 = vmul.f32 %v2909_v46, %v2485_v13  ;;  %v319_v32 = vrot.slane %v3033_v52, 1  ;;  %v381_v3 = vmul.f32 %v2913_v54, %v2485_v13 }
  0x96   : > { %v1094_v27 = vadd.f32 %v1058_v49, %v970_v37  ;;  %v538_v35 = vadd.f32 %v522_v50, %v477_v20  ;;  %v523_v40 = vmul.f32 %v2981_v45, %v2498_v18  ;;  %v566_v26 = vmul.f32 %v2981_v45, %v2492_v14  ;;  %v2145_v49 = vld [vmem:[%s2490_s29 + $0xd0] sm:$0x3]  ;;  %v2169_v37 = vld [vmem:[%s2490_s29 + $0xe8] sm:$0x3] }
  0x97   : > { %v443_v38 = vrot.slane %v380_v10, 2  ;;  %v567_v17 = vmul.f32 %v2985_v58, %v2492_v14  ;;  %v320_v41 = vsel %vm282_vm0, %v318_v48, %v319_v32  ;;  %v444_v21 = vrot.slane %v381_v3, 2 }
  0x98   : > { %1110 = vst [vmem:[%s2603_s6 + $0x60] sm:$0xff] %v1094_v27  ;;  %v662_v46 = vadd.f32 %v627_v31, %v538_v35  ;;  %v690_v8 = vmul.f32 %v2981_v45, %v2494_v15  ;;  %v353_v29 = vadd.f32 %v320_v41, %v228_v22  ;;  %v628_v44 = vrot.slane %v566_v26, 1 }
  0x99   : > { %v629_v47 = vrot.slane %v567_v17, 1  ;;  %v691_v36 = vmul.f32 %v2985_v58, %v2494_v15  ;;  %v936_v9 = vsel %vm282_vm0, %v933_v60, %v935_v39  ;;  %v445_v23 = vsel %vm407_vm1, %v443_v38, %v444_v21  ;;  %v3073_v60 = vld [vmem:[%s3760_s1 + $0x8] ss:$0 sm:$0xff] }
  0x9a   : > { %v786_v24 = vadd.f32 %v751_v56, %v662_v46  ;;  %v752_v55 = vrot.slane %v690_v8, 2  ;;  %v478_v59 = vadd.f32 %v445_v23, %v353_v29  ;;  %v875_v51 = vmul.f32 %v3058_v57, %v2511_v25 }
  0x9b   : > { %v630_v2 = vsel %vm282_vm0, %v628_v44, %v629_v47  ;;  %v753_v30 = vrot.slane %v691_v36, 2  ;;  %v3068_v50 = vmul.f32 %v3062_v43, %v2511_v25  ;;  %v999_v4 = vmul.f32 %v3073_v60, %v3058_v57 }
  0x9c   : > { %v847_v28 = vadd.f32 %v831_v16, %v786_v24  ;;  %v3079_v5 = vmul.f32 %v3073_v60, %v3062_v43  ;;  %v1060_v33 = vsel %vm407_vm1, %v1057_v53, %v1059_v34  ;;  %v539_v62 = vadd.f32 %v523_v40, %v478_v59 }
  0x9d   : > { %v754_v0 = vsel %vm407_vm1, %v752_v55, %v753_v30  ;;  %v832_v6 = vmul.f32 %v3058_v57, %v2500_v19  ;;  %v937_v7 = vrot.slane %v875_v51, 1  ;;  %v938_v31 = vrot.slane %v3068_v50, 1 }
  0x9e   : > { %v971_v61 = vadd.f32 %v936_v9, %v847_v28  ;;  %v229_v16 = vmul.f32 %v2913_v54, %v2481_v11  ;;  %v663_v39 = vadd.f32 %v630_v2, %v539_v62  ;;  %v1061_v1 = vrot.slane %v999_v4, 2 }
  0x9f   : > { %v257_v42 = vmul.f32 %v2483_v12, %v209_v63  ;;  %v382_v53 = vmul.f32 %v2485_v13, %v209_v63  ;;  %v1062_v34 = vrot.slane %v3079_v5, 2  ;;  %v524_v52 = vmul.f32 %v2985_v58, %v2498_v18 }
  0xa0   : > { %v1095_v20 = vadd.f32 %v1060_v33, %v971_v61  ;;  %v568_v56 = vmul.f32 %v2145_v49, %v2492_v14  ;;  %v787_v22 = vadd.f32 %v754_v0, %v663_v39  ;;  %v692_v54 = vmul.f32 %v2145_v49, %v2494_v15 }
  0xa1   : > { %v321_v48 = vrot.slane %v257_v42, 1  ;;  %v446_v10 = vrot.slane %v382_v53, 2  ;;  %v939_v27 = vsel %vm282_vm0, %v937_v7, %v938_v31  ;;  %v877_v3 = vmul.f32 %v2169_v37, %v2511_v25  ;;  %v3135_v42 = vld [vmem:[%s2490_s29 + $0xf0] sm:$0xff] }
  0xa2   : > { %1111 = vst [vmem:[%s2603_s6 + $0x68] sm:$0xff] %v1095_v20  ;;  %v631_v35 = vrot.slane %v568_v56, 1  ;;  %v1001_v38 = vmul.f32 %v3073_v60, %v2169_v37  ;;  %v848_v40 = vadd.f32 %v832_v6, %v787_v22  ;;  %v755_v46 = vrot.slane %v692_v54, 2 }
  0xa3   : > { %v322_v26 = vsel %vm282_vm0, %v319_v32, %v321_v48  ;;  %v447_v17 = vsel %vm407_vm1, %v444_v21, %v446_v10  ;;  %v1063_v41 = vsel %vm407_vm1, %v1061_v1, %v1062_v34  ;;  %v833_v44 = vmul.f32 %v3062_v43, %v2500_v19 }
  0xa4   : > { %v354_v8 = vadd.f32 %v322_v26, %v229_v16  ;;  %v632_v29 = vsel %vm282_vm0, %v629_v47, %v631_v35  ;;  %v972_v36 = vadd.f32 %v939_v27, %v848_v40  ;;  %v940_v24 = vrot.slane %v877_v3, 1  ;;  %v2173_v27 = vld [vmem:[%s2490_s29 + $0xd0] sm:$0x3]  ;;  %v2197_v40 = vld [vmem:[%s2490_s29 + $0xe8] sm:$0x3] }
  0xa5   : > { %v1064_v9 = vrot.slane %v1001_v38, 2  ;;  %v1155_v23 = vmul.f32 %v2981_v45, %v2483_v12  ;;  %v756_v32 = vsel %vm407_vm1, %v753_v30, %v755_v46  ;;  %v1139_v21 = vmul.f32 %v2981_v45, %v2481_v11 }
  0xa6   : > { %v479_v55 = vadd.f32 %v447_v17, %v354_v8  ;;  %v1156_v59 = vmul.f32 %v2985_v58, %v2483_v12  ;;  %v1096_v47 = vadd.f32 %v1063_v41, %v972_v36  ;;  %v1275_v51 = vmul.f32 %v2981_v45, %v2485_v13 }
  0xa7   : > { %v1203_v2 = vrot.slane %v1155_v23, 1  ;;  %v1276_v28 = vmul.f32 %v2985_v58, %v2485_v13  ;;  %v1420_v30 = vmul.f32 %v3058_v57, %v2498_v18  ;;  %v1452_v5 = vmul.f32 %v3058_v57, %v2492_v14 }
  0xa8   : > { %v540_v50 = vadd.f32 %v524_v52, %v479_v55  ;;  %v1204_v4 = vrot.slane %v1156_v59, 1  ;;  %1112 = vst [vmem:[%s2603_s6 + $0x70] sm:$0xff] %v1096_v47  ;;  %v1323_v63 = vrot.slane %v1275_v51, 2  ;;  %v1453_v62 = vmul.f32 %v3062_v43, %v2492_v14  ;;  %v3139_v52 = vld [vmem:[%s2490_s29 + $0xf8] sm:$0xff]  ;;  %v2221_v55 = vld [vmem:[%s2490_s29 + $0x100] sm:$0x3] }
  0xa9   : > { %v1324_v33 = vrot.slane %v1276_v28, 2  ;;  %v1572_v45 = vmul.f32 %v3058_v57, %v2494_v15  ;;  %v1500_v49 = vrot.slane %v1452_v5, 1  ;;  %v1573_v61 = vmul.f32 %v3062_v43, %v2494_v15 }
  0xaa   : > { %v664_v0 = vadd.f32 %v632_v29, %v540_v50  ;;  %v1205_v6 = vsel %vm282_vm0, %v1203_v2, %v1204_v4  ;;  %v1501_v39 = vrot.slane %v1453_v62, 1  ;;  %v941_v37 = vsel %vm282_vm0, %v938_v31, %v940_v24 }
  0xab   : > { %v1259_v7 = vadd.f32 %v1205_v6, %v1139_v21  ;;  %v1325_v16 = vsel %vm407_vm1, %v1323_v63, %v1324_v33  ;;  %v1620_v1 = vrot.slane %v1572_v45, 2  ;;  %v1621_v20 = vrot.slane %v1573_v61, 2 }
  0xac   : > { %v788_v53 = vadd.f32 %v756_v32, %v664_v0  ;;  %v1749_v56 = vmul.f32 %v3135_v42, %v2511_v25  ;;  %v1065_v22 = vsel %vm407_vm1, %v1062_v34, %v1064_v9  ;;  %v3146_v10 = vmul.f32 %v3139_v52, %v2511_v25 }
  0xad   : > { %v1379_v48 = vadd.f32 %v1325_v16, %v1259_v7  ;;  %v1869_v54 = vmul.f32 %v3073_v60, %v3135_v42  ;;  %v1502_v31 = vsel %vm282_vm0, %v1500_v49, %v1501_v39  ;;  %v3154_v38 = vmul.f32 %v3073_v60, %v3139_v52 }
  0xae   : > { %v849_v35 = vadd.f32 %v833_v44, %v788_v53  ;;  %v1797_v3 = vrot.slane %v1749_v56, 1  ;;  %v1622_v26 = vsel %vm407_vm1, %v1620_v1, %v1621_v20  ;;  %v1717_v17 = vmul.f32 %v3135_v42, %v2500_v19 }
  0xaf   : > { %v1436_v34 = vadd.f32 %v1420_v30, %v1379_v48  ;;  %v1798_v46 = vrot.slane %v3146_v10, 1  ;;  %v1917_v8 = vrot.slane %v1869_v54, 2  ;;  %v1157_v29 = vmul.f32 %v2173_v27, %v2483_v12 }
  0xb0   : > { %v973_v41 = vadd.f32 %v941_v37, %v849_v35  ;;  %v1277_v44 = vmul.f32 %v2173_v27, %v2485_v13  ;;  %v1918_v24 = vrot.slane %v3154_v38, 2  ;;  %v1140_v9 = vmul.f32 %v2985_v58, %v2481_v11 }
  0xb1   : > { %v1556_v36 = vadd.f32 %v1502_v31, %v1436_v34  ;;  %v1454_v23 = vmul.f32 %v2197_v40, %v2492_v14  ;;  %v1799_v21 = vsel %vm282_vm0, %v1797_v3, %v1798_v46  ;;  %v1206_v59 = vrot.slane %v1157_v29, 1 }
  0xb2   : > { %v1097_v32 = vadd.f32 %v1065_v22, %v973_v41  ;;  %v1326_v47 = vrot.slane %v1277_v44, 2  ;;  %v1421_v51 = vmul.f32 %v3062_v43, %v2498_v18  ;;  %v1574_v50 = vmul.f32 %v2197_v40, %v2494_v15 }
  0xb3   : > { %v1676_v2 = vadd.f32 %v1622_v26, %v1556_v36  ;;  %v1503_v28 = vrot.slane %v1454_v23, 1  ;;  %v1207_v30 = vsel %vm282_vm0, %v1204_v4, %v1206_v59  ;;  %v1751_v5 = vmul.f32 %v2221_v55, %v2511_v25 }
  0xb4   : > { %1113 = vst [vmem:[%s2603_s6 + $0x78] sm:$0xff] %v1097_v32  ;;  %v1327_v58 = vsel %vm407_vm1, %v1324_v33, %v1326_v47  ;;  %v1871_v63 = vmul.f32 %v3073_v60, %v2221_v55  ;;  %v1919_v45 = vsel %vm407_vm1, %v1917_v8, %v1918_v24  ;;  %v1260_v0 = vadd.f32 %v1207_v30, %v1140_v9  ;;  %v3212_v55 = vld [vmem:[%s2490_s29 + $0x108] sm:$0xff]  ;;  %v3216_v47 = vld [vmem:[%s2490_s29 + $0x110] sm:$0xff] }
  0xb5   : > { %v1733_v62 = vadd.f32 %v1717_v17, %v1676_v2  ;;  %v1623_v6 = vrot.slane %v1574_v50, 2  ;;  %v1504_v49 = vsel %vm282_vm0, %v1501_v39, %v1503_v28  ;;  %v1718_v61 = vmul.f32 %v3139_v52, %v2500_v19  ;;  %v2176_v30 = vld [vmem:[%s2490_s29 + $0xe8] sm:$0x3] }
  0xb6   : > { %v1800_v7 = vrot.slane %v1751_v5, 1  ;;  %v1158_v4 = vmul.f32 %v3058_v57, %v2483_v12  ;;  %v1380_v16 = vadd.f32 %v1327_v58, %v1260_v0  ;;  %v1920_v1 = vrot.slane %v1871_v63, 2 }
  0xb7   : > { %v1853_v33 = vadd.f32 %v1799_v21, %v1733_v62  ;;  %v3187_v53 = vmul.f32 %v3062_v43, %v2483_v12  ;;  %v1624_v37 = vsel %vm407_vm1, %v1621_v20, %v1623_v6  ;;  %v1141_v39 = vmul.f32 %v3058_v57, %v2481_v11 }
  0xb8   : > { %v1208_v56 = vrot.slane %v1158_v4, 1  ;;  %v1278_v22 = vmul.f32 %v3058_v57, %v2485_v13  ;;  %v1437_v10 = vadd.f32 %v1421_v51, %v1380_v16  ;;  %v1279_v27 = vmul.f32 %v3062_v43, %v2485_v13 }
  0xb9   : > { %v1973_v48 = vadd.f32 %v1919_v45, %v1853_v33  ;;  %v1209_v54 = vrot.slane %v3187_v53, 1  ;;  %v1422_v31 = vmul.f32 %v3135_v42, %v2498_v18  ;;  %v1455_v20 = vmul.f32 %v3135_v42, %v2492_v14  ;;  %v2200_v45 = vld [vmem:[%s2490_s29 + $0x100] sm:$0x3]  ;;  %v2224_v33 = vld [vmem:[%s2490_s29 + $0x118] sm:$0x3] }
  0xba   : > { %v1328_v35 = vrot.slane %v1278_v22, 2  ;;  %v1456_v3 = vmul.f32 %v3139_v52, %v2492_v14  ;;  %v1557_v57 = vadd.f32 %v1504_v49, %v1437_v10  ;;  %v1329_v34 = vrot.slane %v1279_v27, 2 }
  0xbb   : > { %2243 = vst [vmem:[%s2603_s6 + $0x80] sm:$0xff] %v1973_v48  ;;  %v1210_v40 = vsel %vm282_vm0, %v1208_v56, %v1209_v54  ;;  %v1575_v26 = vmul.f32 %v3135_v42, %v2494_v15  ;;  %v1505_v41 = vrot.slane %v1455_v20, 1  ;;  %v1576_v29 = vmul.f32 %v3139_v52, %v2494_v15 }
  0xbc   : > { %v1261_v17 = vadd.f32 %v1210_v40, %v1141_v39  ;;  %v1506_v8 = vrot.slane %v1456_v3, 1  ;;  %v1677_v44 = vadd.f32 %v1624_v37, %v1557_v57  ;;  %v1801_v36 = vsel %vm282_vm0, %v1798_v46, %v1800_v7 }
  0xbd   : > { %v1330_v9 = vsel %vm407_vm1, %v1328_v35, %v1329_v34  ;;  %v1625_v23 = vrot.slane %v1575_v26, 2  ;;  %v1626_v59 = vrot.slane %v1576_v29, 2  ;;  %v1752_v2 = vmul.f32 %v3212_v55, %v2511_v25 }
  0xbe   : > { %v1381_v32 = vadd.f32 %v1330_v9, %v1261_v17  ;;  %v1507_v21 = vsel %vm282_vm0, %v1505_v41, %v1506_v8  ;;  %v1734_v51 = vadd.f32 %v1718_v61, %v1677_v44  ;;  %v3222_v28 = vmul.f32 %v3216_v47, %v2511_v25 }
  0xbf   : > { %v1872_v46 = vmul.f32 %v3073_v60, %v3212_v55  ;;  %v3228_v50 = vmul.f32 %v3073_v60, %v3216_v47  ;;  %v1921_v58 = vsel %vm407_vm1, %v1918_v24, %v1920_v1  ;;  %v1627_v63 = vsel %vm407_vm1, %v1625_v23, %v1626_v59 }
  0xc0   : > { %v1438_v5 = vadd.f32 %v1422_v31, %v1381_v32  ;;  %v1719_v62 = vmul.f32 %v3212_v55, %v2500_v19  ;;  %v1854_v0 = vadd.f32 %v1801_v36, %v1734_v51  ;;  %v1802_v6 = vrot.slane %v1752_v2, 1 }
  0xc1   : > { %v1803_v49 = vrot.slane %v3222_v28, 1  ;;  %v1142_v61 = vmul.f32 %v3062_v43, %v2481_v11  ;;  %v1922_v4 = vrot.slane %v1872_v46, 2  ;;  %v1160_v38 = vmul.f32 %v2176_v30, %v2483_v12 }
  0xc2   : > { %v1558_v7 = vadd.f32 %v1507_v21, %v1438_v5  ;;  %v1280_v24 = vmul.f32 %v2176_v30, %v2485_v13  ;;  %v1974_v16 = vadd.f32 %v1921_v58, %v1854_v0  ;;  %v1923_v1 = vrot.slane %v3228_v50, 2 }
  0xc3   : > { %v1423_v53 = vmul.f32 %v3139_v52, %v2498_v18  ;;  %v1457_v37 = vmul.f32 %v2200_v45, %v2492_v14  ;;  %v1211_v56 = vrot.slane %v1160_v38, 1  ;;  %v1577_v43 = vmul.f32 %v2200_v45, %v2494_v15  ;;  %v3284_v38 = vld [vmem:[%s2490_s29 + $0x120] sm:$0xff] }
  0xc4   : > { %v1678_v39 = vadd.f32 %v1627_v63, %v1558_v7  ;;  %v1331_v22 = vrot.slane %v1280_v24, 2  ;;  %2244 = vst [vmem:[%s2603_s6 + $0x88] sm:$0xff] %v1974_v16  ;;  %v1804_v48 = vsel %vm282_vm0, %v1802_v6, %v1803_v49  ;;  %v1754_v27 = vmul.f32 %v2224_v33, %v2511_v25 }
  0xc5   : > { %v1508_v10 = vrot.slane %v1457_v37, 1  ;;  %v1874_v35 = vmul.f32 %v3073_v60, %v2224_v33  ;;  %v1212_v20 = vsel %vm282_vm0, %v1209_v54, %v1211_v56  ;;  %v1628_v57 = vrot.slane %v1577_v43, 2 }
  0xc6   : > { %v1735_v31 = vadd.f32 %v1719_v62, %v1678_v39  ;;  %v1332_v3 = vsel %vm407_vm1, %v1329_v34, %v1331_v22  ;;  %v1924_v40 = vsel %vm407_vm1, %v1922_v4, %v1923_v1  ;;  %v1262_v26 = vadd.f32 %v1212_v20, %v1142_v61 }
  0xc7   : > { %v1509_v17 = vsel %vm282_vm0, %v1506_v8, %v1508_v10  ;;  %v1720_v41 = vmul.f32 %v3216_v47, %v2500_v19  ;;  %v1805_v44 = vrot.slane %v1754_v27, 1  ;;  %v1925_v36 = vrot.slane %v1874_v35, 2 }
  0xc8   : > { %v1855_v29 = vadd.f32 %v1804_v48, %v1735_v31  ;;  %v1161_v9 = vmul.f32 %v3135_v42, %v2483_v12  ;;  %v1382_v23 = vadd.f32 %v1332_v3, %v1262_v26  ;;  %v1629_v54 = vsel %vm407_vm1, %v1626_v59, %v1628_v57  ;;  %v2179_v48 = vld [vmem:[%s2490_s29 + $0x100] sm:$0x3]  ;;  %v2203_v31 = vld [vmem:[%s2490_s29 + $0x118] sm:$0x3] }
  0xc9   : > { %v1143_v34 = vmul.f32 %v3135_v42, %v2481_v11  ;;  %v1162_v32 = vmul.f32 %v3139_v52, %v2483_v12  ;;  %v1281_v2 = vmul.f32 %v3135_v42, %v2485_v13  ;;  %v1282_v51 = vmul.f32 %v3139_v52, %v2485_v13 }
  0xca   : > { %v1975_v8 = vadd.f32 %v1924_v40, %v1855_v29  ;;  %v1213_v21 = vrot.slane %v1161_v9, 1  ;;  %v1439_v28 = vadd.f32 %v1423_v53, %v1382_v23  ;;  %v1424_v59 = vmul.f32 %v3212_v55, %v2498_v18  ;;  %v3288_v53 = vld [vmem:[%s2490_s29 + $0x128] sm:$0xff]  ;;  %v2227_v23 = vld [vmem:[%s2490_s29 + $0x130] sm:$0x3] }
  0xcb   : > { %v1214_v46 = vrot.slane %v1162_v32, 1  ;;  %v1458_v50 = vmul.f32 %v3212_v55, %v2492_v14  ;;  %v1333_v30 = vrot.slane %v1281_v2, 2  ;;  %v1334_v58 = vrot.slane %v1282_v51, 2 }
  0xcc   : > { %2245 = vst [vmem:[%s2603_s6 + $0x90] sm:$0xff] %v1975_v8  ;;  %v1459_v5 = vmul.f32 %v3216_v47, %v2492_v14  ;;  %v1578_v42 = vmul.f32 %v3212_v55, %v2494_v15  ;;  %v1559_v63 = vadd.f32 %v1509_v17, %v1439_v28  ;;  %v1579_v0 = vmul.f32 %v3216_v47, %v2494_v15 }
  0xcd   : > { %v1215_v62 = vsel %vm282_vm0, %v1213_v21, %v1214_v46  ;;  %v1510_v45 = vrot.slane %v1458_v50, 1  ;;  %v1335_v61 = vsel %vm407_vm1, %v1333_v30, %v1334_v58  ;;  %v1806_v33 = vsel %vm282_vm0, %v1803_v49, %v1805_v44 }
  0xce   : > { %v1263_v6 = vadd.f32 %v1215_v62, %v1143_v34  ;;  %v1511_v7 = vrot.slane %v1459_v5, 1  ;;  %v1630_v4 = vrot.slane %v1578_v42, 2  ;;  %v1679_v24 = vadd.f32 %v1629_v54, %v1559_v63 }
  0xcf   : > { %v1631_v16 = vrot.slane %v1579_v0, 2  ;;  %v1755_v37 = vmul.f32 %v3284_v38, %v2511_v25  ;;  %v1926_v39 = vsel %vm407_vm1, %v1923_v1, %v1925_v36  ;;  %v3295_v22 = vmul.f32 %v3288_v53, %v2511_v25 }
  0xd0   : > { %v1383_v56 = vadd.f32 %v1335_v61, %v1263_v6  ;;  %v1875_v43 = vmul.f32 %v3073_v60, %v3284_v38  ;;  %v1736_v10 = vadd.f32 %v1720_v41, %v1679_v24  ;;  %v1512_v49 = vsel %vm282_vm0, %v1510_v45, %v1511_v7 }
  0xd1   : > { %v1807_v27 = vrot.slane %v1755_v37, 1  ;;  %v3303_v35 = vmul.f32 %v3073_v60, %v3288_v53  ;;  %v1632_v20 = vsel %vm407_vm1, %v1630_v4, %v1631_v16  ;;  %v1721_v3 = vmul.f32 %v3284_v38, %v2500_v19 }
  0xd2   : > { %v1440_v1 = vadd.f32 %v1424_v59, %v1383_v56  ;;  %v1808_v57 = vrot.slane %v3295_v22, 1  ;;  %v1856_v40 = vadd.f32 %v1806_v33, %v1736_v10  ;;  %v1927_v26 = vrot.slane %v1875_v43, 2 }
  0xd3   : > { %v1163_v17 = vmul.f32 %v2179_v48, %v2483_v12  ;;  %v1283_v41 = vmul.f32 %v2179_v48, %v2485_v13  ;;  %v1928_v44 = vrot.slane %v3303_v35, 2  ;;  %v1144_v36 = vmul.f32 %v3139_v52, %v2481_v11 }
  0xd4   : > { %v1560_v29 = vadd.f32 %v1512_v49, %v1440_v1  ;;  %v1460_v9 = vmul.f32 %v2203_v31, %v2492_v14  ;;  %v1976_v54 = vadd.f32 %v1926_v39, %v1856_v40  ;;  %v1809_v34 = vsel %vm282_vm0, %v1807_v27, %v1808_v57 }
  0xd5   : > { %v1216_v32 = vrot.slane %v1163_v17, 1  ;;  %v1336_v8 = vrot.slane %v1283_v41, 2  ;;  %v1425_v2 = vmul.f32 %v3216_v47, %v2498_v18  ;;  %v1580_v28 = vmul.f32 %v2203_v31, %v2494_v15 }
  0xd6   : > { %v1680_v21 = vadd.f32 %v1632_v20, %v1560_v29  ;;  %v1513_v51 = vrot.slane %v1460_v9, 1  ;;  %2246 = vst [vmem:[%s2603_s6 + $0x98] sm:$0xff] %v1976_v54  ;;  %v1757_v50 = vmul.f32 %v2227_v23, %v2511_v25  ;;  %v1877_v30 = vmul.f32 %v3073_v60, %v2227_v23  ;;  %v3361_v23 = vld [vmem:[%s2490_s29 + $0x138] sm:$0xff] }
  0xd7   : > { %v1217_v59 = vsel %vm282_vm0, %v1214_v46, %v1216_v32  ;;  %v1337_v52 = vsel %vm407_vm1, %v1334_v58, %v1336_v8  ;;  %v1929_v42 = vsel %vm407_vm1, %v1927_v26, %v1928_v44  ;;  %v1633_v62 = vrot.slane %v1580_v28, 2  ;;  %v3365_v8 = vld [vmem:[%s2490_s29 + $0x140] sm:$0xff] }
  0xd8   : > { %v1737_v5 = vadd.f32 %v1721_v3, %v1680_v21  ;;  %v1264_v63 = vadd.f32 %v1217_v59, %v1144_v36  ;;  %v1514_v45 = vsel %vm282_vm0, %v1511_v7, %v1513_v51  ;;  %v1722_v0 = vmul.f32 %v3288_v53, %v2500_v19  ;;  %v2182_v59 = vld [vmem:[%s2490_s29 + $0x118] sm:$0x3] }
  0xd9   : > { %v1810_v6 = vrot.slane %v1757_v50, 1  ;;  %v1164_v46 = vmul.f32 %v3212_v55, %v2483_v12  ;;  %v1930_v4 = vrot.slane %v1877_v30, 2  ;;  %v3336_v24 = vmul.f32 %v3216_v47, %v2483_v12 }
  0xda   : > { %v1857_v58 = vadd.f32 %v1809_v34, %v1737_v5  ;;  %v1384_v61 = vadd.f32 %v1337_v52, %v1264_v63  ;;  %v1634_v33 = vsel %vm407_vm1, %v1631_v16, %v1633_v62  ;;  %v1145_v7 = vmul.f32 %v3212_v55, %v2481_v11 }
  0xdb   : > { %v1218_v37 = vrot.slane %v1164_v46, 1  ;;  %v1284_v39 = vmul.f32 %v3212_v55, %v2485_v13  ;;  %v1219_v43 = vrot.slane %v3336_v24, 1  ;;  %v1285_v48 = vmul.f32 %v3216_v47, %v2485_v13 }
  0xdc   : > { %v1977_v56 = vadd.f32 %v1929_v42, %v1857_v58  ;;  %v1441_v22 = vadd.f32 %v1425_v2, %v1384_v61  ;;  %v1426_v49 = vmul.f32 %v3284_v38, %v2498_v18  ;;  %v1461_v16 = vmul.f32 %v3284_v38, %v2492_v14  ;;  %v2206_v42 = vld [vmem:[%s2490_s29 + $0x130] sm:$0x3]  ;;  %v2230_v58 = vld [vmem:[%s2490_s29 + $0x148] sm:$0x3] }
  0xdd   : > { %v1338_v10 = vrot.slane %v1284_v39, 2  ;;  %v1462_v27 = vmul.f32 %v3288_v53, %v2492_v14  ;;  %v1220_v31 = vsel %vm282_vm0, %v1218_v37, %v1219_v43  ;;  %v1339_v1 = vrot.slane %v1285_v48, 2 }
  0xde   : > { %2247 = vst [vmem:[%s2603_s6 + $0xa0] sm:$0xff] %v1977_v56  ;;  %v1561_v55 = vadd.f32 %v1514_v45, %v1441_v22  ;;  %v1581_v20 = vmul.f32 %v3284_v38, %v2494_v15  ;;  %v1265_v3 = vadd.f32 %v1220_v31, %v1145_v7  ;;  %v1515_v40 = vrot.slane %v1461_v16, 1 }
  0xdf   : > { %v1516_v26 = vrot.slane %v1462_v27, 1  ;;  %v1582_v17 = vmul.f32 %v3288_v53, %v2494_v15  ;;  %v1811_v29 = vsel %vm282_vm0, %v1808_v57, %v1810_v6  ;;  %v1340_v36 = vsel %vm407_vm1, %v1338_v10, %v1339_v1 }
  0xe0   : > { %v1681_v41 = vadd.f32 %v1634_v33, %v1561_v55  ;;  %v1635_v9 = vrot.slane %v1581_v20, 2  ;;  %v1385_v54 = vadd.f32 %v1340_v36, %v1265_v3  ;;  %v1758_v21 = vmul.f32 %v3361_v23, %v2511_v25 }
  0xe1   : > { %v1517_v34 = vsel %vm282_vm0, %v1515_v40, %v1516_v26  ;;  %v1636_v32 = vrot.slane %v1582_v17, 2  ;;  %v3371_v51 = vmul.f32 %v3365_v8, %v2511_v25  ;;  %v1878_v57 = vmul.f32 %v3073_v60, %v3361_v23 }
  0xe2   : > { %v1738_v2 = vadd.f32 %v1722_v0, %v1681_v41  ;;  %v3377_v28 = vmul.f32 %v3073_v60, %v3365_v8  ;;  %v1931_v52 = vsel %vm407_vm1, %v1928_v44, %v1930_v4  ;;  %v1442_v50 = vadd.f32 %v1426_v49, %v1385_v54 }
  0xe3   : > { %v1637_v30 = vsel %vm407_vm1, %v1635_v9, %v1636_v32  ;;  %v1723_v5 = vmul.f32 %v3361_v23, %v2500_v19  ;;  %v1812_v62 = vrot.slane %v1758_v21, 1  ;;  %v1813_v45 = vrot.slane %v3371_v51, 1 }
  0xe4   : > { %v1858_v63 = vadd.f32 %v1811_v29, %v1738_v2  ;;  %v1146_v0 = vmul.f32 %v3216_v47, %v2481_v11  ;;  %v1562_v6 = vadd.f32 %v1517_v34, %v1442_v50  ;;  %v1932_v46 = vrot.slane %v1878_v57, 2 }
  0xe5   : > { %v1166_v35 = vmul.f32 %v2182_v59, %v2483_v12  ;;  %v1286_v44 = vmul.f32 %v2182_v59, %v2485_v13  ;;  %v1933_v4 = vrot.slane %v3377_v28, 2  ;;  %v1427_v24 = vmul.f32 %v3288_v53, %v2498_v18 }
  0xe6   : > { %v1978_v61 = vadd.f32 %v1931_v52, %v1858_v63  ;;  %v1463_v33 = vmul.f32 %v2206_v42, %v2492_v14  ;;  %v1682_v7 = vadd.f32 %v1637_v30, %v1562_v6  ;;  %v1583_v47 = vmul.f32 %v2206_v42, %v2494_v15 }
  0xe7   : > { %v1221_v37 = vrot.slane %v1166_v35, 1  ;;  %v1341_v39 = vrot.slane %v1286_v44, 2  ;;  %v1814_v56 = vsel %vm282_vm0, %v1812_v62, %v1813_v45  ;;  %v1760_v48 = vmul.f32 %v2230_v58, %v2511_v25  ;;  %v3433_v35 = vld [vmem:[%s2490_s29 + $0x150] sm:$0xff] }
  0xe8   : > { %2248 = vst [vmem:[%s2603_s6 + $0xa8] sm:$0xff] %v1978_v61  ;;  %v1518_v22 = vrot.slane %v1463_v33, 1  ;;  %v1880_v10 = vmul.f32 %v3073_v60, %v2230_v58  ;;  %v1739_v49 = vadd.f32 %v1723_v5, %v1682_v7  ;;  %v1638_v55 = vrot.slane %v1583_v47, 2 }
  0xe9   : > { %v1222_v16 = vsel %vm282_vm0, %v1219_v43, %v1221_v37  ;;  %v1342_v27 = vsel %vm407_vm1, %v1339_v1, %v1341_v39  ;;  %v1934_v31 = vsel %vm407_vm1, %v1932_v46, %v1933_v4  ;;  %v1724_v40 = vmul.f32 %v3365_v8, %v2500_v19 }
  0xea   : > { %v1266_v20 = vadd.f32 %v1222_v16, %v1146_v0  ;;  %v1519_v3 = vsel %vm282_vm0, %v1516_v26, %v1518_v22  ;;  %v1859_v17 = vadd.f32 %v1814_v56, %v1739_v49  ;;  %v1815_v41 = vrot.slane %v1760_v48, 1  ;;  %v2185_v56 = vld [vmem:[%s2490_s29 + $0x130] sm:$0x3]  ;;  %v2209_v49 = vld [vmem:[%s2490_s29 + $0x148] sm:$0x3] }
  0xeb   : > { %v1935_v29 = vrot.slane %v1880_v10, 2  ;;  %v1167_v36 = vmul.f32 %v3284_v38, %v2483_v12  ;;  %v1639_v43 = vsel %vm407_vm1, %v1636_v32, %v1638_v55  ;;  %v1147_v1 = vmul.f32 %v3284_v38, %v2481_v11 }
  0xec   : > { %v1386_v9 = vadd.f32 %v1342_v27, %v1266_v20  ;;  %v1168_v54 = vmul.f32 %v3288_v53, %v2483_v12  ;;  %v1979_v26 = vadd.f32 %v1934_v31, %v1859_v17  ;;  %v1287_v21 = vmul.f32 %v3284_v38, %v2485_v13 }
  0xed   : > { %v1223_v34 = vrot.slane %v1167_v36, 1  ;;  %v1288_v2 = vmul.f32 %v3288_v53, %v2485_v13  ;;  %v1428_v32 = vmul.f32 %v3361_v23, %v2498_v18  ;;  %v1464_v28 = vmul.f32 %v3361_v23, %v2492_v14 }
  0xee   : > { %v1443_v51 = vadd.f32 %v1427_v24, %v1386_v9  ;;  %v1224_v57 = vrot.slane %v1168_v54, 1  ;;  %2249 = vst [vmem:[%s2603_s6 + $0xb0] sm:$0xff] %v1979_v26  ;;  %v1343_v59 = vrot.slane %v1287_v21, 2  ;;  %v1465_v50 = vmul.f32 %v3365_v8, %v2492_v14  ;;  %v3437_v24 = vld [vmem:[%s2490_s29 + $0x158] sm:$0xff]  ;;  %v2233_v9 = vld [vmem:[%s2490_s29 + $0x160] sm:$0x3] }
  0xef   : > { %v1344_v52 = vrot.slane %v1288_v2, 2  ;;  %v1584_v38 = vmul.f32 %v3361_v23, %v2494_v15  ;;  %v1520_v42 = vrot.slane %v1464_v28, 1  ;;  %v1585_v63 = vmul.f32 %v3365_v8, %v2494_v15 }
  0xf0   : > { %v1563_v30 = vadd.f32 %v1519_v3, %v1443_v51  ;;  %v1225_v5 = vsel %vm282_vm0, %v1223_v34, %v1224_v57  ;;  %v1521_v6 = vrot.slane %v1465_v50, 1  ;;  %v1816_v58 = vsel %vm282_vm0, %v1813_v45, %v1815_v41 }
  0xf1   : > { %v1267_v62 = vadd.f32 %v1225_v5, %v1147_v1  ;;  %v1345_v0 = vsel %vm407_vm1, %v1343_v59, %v1344_v52  ;;  %v1640_v46 = vrot.slane %v1584_v38, 2  ;;  %v1641_v61 = vrot.slane %v1585_v63, 2 }
  0xf2   : > { %v1683_v44 = vadd.f32 %v1639_v43, %v1563_v30  ;;  %v1761_v33 = vmul.f32 %v3433_v35, %v2511_v25  ;;  %v1936_v7 = vsel %vm407_vm1, %v1933_v4, %v1935_v29  ;;  %v3444_v39 = vmul.f32 %v3437_v24, %v2511_v25 }
  0xf3   : > { %v1387_v37 = vadd.f32 %v1345_v0, %v1267_v62  ;;  %v1881_v47 = vmul.f32 %v3073_v60, %v3433_v35  ;;  %v1522_v45 = vsel %vm282_vm0, %v1520_v42, %v1521_v6  ;;  %v3452_v10 = vmul.f32 %v3073_v60, %v3437_v24 }
  0xf4   : > { %v1740_v22 = vadd.f32 %v1724_v40, %v1683_v44  ;;  %v1817_v48 = vrot.slane %v1761_v33, 1  ;;  %v1642_v16 = vsel %vm407_vm1, %v1640_v46, %v1641_v61  ;;  %v1725_v27 = vmul.f32 %v3433_v35, %v2500_v19 }
  0xf5   : > { %v1444_v4 = vadd.f32 %v1428_v32, %v1387_v37  ;;  %v1818_v55 = vrot.slane %v3444_v39, 1  ;;  %v1937_v20 = vrot.slane %v1881_v47, 2  ;;  %v1169_v3 = vmul.f32 %v2185_v56, %v2483_v12 }
  0xf6   : > { %v1860_v31 = vadd.f32 %v1816_v58, %v1740_v22  ;;  %v1289_v40 = vmul.f32 %v2185_v56, %v2485_v13  ;;  %v1938_v41 = vrot.slane %v3452_v10, 2  ;;  %v1148_v29 = vmul.f32 %v3288_v53, %v2481_v11 }
  0xf7   : > { %v1564_v17 = vadd.f32 %v1522_v45, %v1444_v4  ;;  %v1466_v36 = vmul.f32 %v2209_v49, %v2492_v14  ;;  %v1819_v1 = vsel %vm282_vm0, %v1817_v48, %v1818_v55  ;;  %v1226_v54 = vrot.slane %v1169_v3, 1 }
  0xf8   : > { %v1980_v43 = vadd.f32 %v1936_v7, %v1860_v31  ;;  %v1346_v26 = vrot.slane %v1289_v40, 2  ;;  %v1429_v21 = vmul.f32 %v3365_v8, %v2498_v18  ;;  %v1586_v51 = vmul.f32 %v2209_v49, %v2494_v15 }
  0xf9   : > { %v1684_v34 = vadd.f32 %v1642_v16, %v1564_v17  ;;  %v1523_v2 = vrot.slane %v1466_v36, 1  ;;  %v1227_v32 = vsel %vm282_vm0, %v1224_v57, %v1226_v54  ;;  %v1763_v28 = vmul.f32 %v2233_v9, %v2511_v25 }
  0xfa   : > { %2250 = vst [vmem:[%s2603_s6 + $0xb8] sm:$0xff] %v1980_v43  ;;  %v1347_v53 = vsel %vm407_vm1, %v1344_v52, %v1346_v26  ;;  %v1883_v59 = vmul.f32 %v3073_v60, %v2233_v9  ;;  %v1939_v38 = vsel %vm407_vm1, %v1937_v20, %v1938_v41  ;;  %v1268_v30 = vadd.f32 %v1227_v32, %v1148_v29  ;;  %v3510_v9 = vld [vmem:[%s2490_s29 + $0x168] sm:$0xff]  ;;  %v3514_v26 = vld [vmem:[%s2490_s29 + $0x170] sm:$0xff] }
  0xfb   : > { %v1741_v50 = vadd.f32 %v1725_v27, %v1684_v34  ;;  %v1643_v5 = vrot.slane %v1586_v51, 2  ;;  %v1524_v42 = vsel %vm282_vm0, %v1521_v6, %v1523_v2  ;;  %v1726_v63 = vmul.f32 %v3437_v24, %v2500_v19  ;;  %v2188_v32 = vld [vmem:[%s2490_s29 + $0x148] sm:$0x3] }
  0xfc   : > { %v1820_v62 = vrot.slane %v1763_v28, 1  ;;  %v1170_v57 = vmul.f32 %v3361_v23, %v2483_v12  ;;  %v1388_v0 = vadd.f32 %v1347_v53, %v1268_v30  ;;  %v1940_v46 = vrot.slane %v1883_v59, 2 }
  0xfd   : > { %v1861_v52 = vadd.f32 %v1819_v1, %v1741_v50  ;;  %v3485_v44 = vmul.f32 %v3365_v8, %v2483_v12  ;;  %v1644_v58 = vsel %vm407_vm1, %v1641_v61, %v1643_v5  ;;  %v1149_v6 = vmul.f32 %v3361_v23, %v2481_v11 }
  0xfe   : > { %v1228_v33 = vrot.slane %v1170_v57, 1  ;;  %v1290_v7 = vmul.f32 %v3361_v23, %v2485_v13  ;;  %v1445_v39 = vadd.f32 %v1429_v21, %v1388_v0  ;;  %v1291_v56 = vmul.f32 %v3365_v8, %v2485_v13 }
  0xff   : > { %v1981_v37 = vadd.f32 %v1939_v38, %v1861_v52  ;;  %v1229_v47 = vrot.slane %v3485_v44, 1  ;;  %v1430_v45 = vmul.f32 %v3433_v35, %v2498_v18  ;;  %v1467_v61 = vmul.f32 %v3433_v35, %v2492_v14  ;;  %v2212_v38 = vld [vmem:[%s2490_s29 + $0x160] sm:$0x3]  ;;  %v2236_v52 = vld [vmem:[%s2490_s29 + $0x178] sm:$0x3] }
 0x100   : > { %v1348_v22 = vrot.slane %v1290_v7, 2  ;;  %v1468_v48 = vmul.f32 %v3437_v24, %v2492_v14  ;;  %v1565_v23 = vadd.f32 %v1524_v42, %v1445_v39  ;;  %v1349_v4 = vrot.slane %v1291_v56, 2 }
 0x101   : > { %2251 = vst [vmem:[%s2603_s6 + $0xc0] sm:$0xff] %v1981_v37  ;;  %v1230_v49 = vsel %vm282_vm0, %v1228_v33, %v1229_v47  ;;  %v1587_v16 = vmul.f32 %v3433_v35, %v2494_v15  ;;  %v1525_v31 = vrot.slane %v1467_v61, 1  ;;  %v1588_v3 = vmul.f32 %v3437_v24, %v2494_v15 }
 0x102   : > { %v1269_v27 = vadd.f32 %v1230_v49, %v1149_v6  ;;  %v1526_v20 = vrot.slane %v1468_v48, 1  ;;  %v1685_v40 = vadd.f32 %v1644_v58, %v1565_v23  ;;  %v1821_v17 = vsel %vm282_vm0, %v1818_v55, %v1820_v62 }
 0x103   : > { %v1350_v29 = vsel %vm407_vm1, %v1348_v22, %v1349_v4  ;;  %v1645_v36 = vrot.slane %v1587_v16, 2  ;;  %v1646_v54 = vrot.slane %v1588_v3, 2  ;;  %v1764_v34 = vmul.f32 %v3510_v9, %v2511_v25 }
 0x104   : > { %v1389_v43 = vadd.f32 %v1350_v29, %v1269_v27  ;;  %v1527_v1 = vsel %vm282_vm0, %v1525_v31, %v1526_v20  ;;  %v1742_v21 = vadd.f32 %v1726_v63, %v1685_v40  ;;  %v3520_v2 = vmul.f32 %v3514_v26, %v2511_v25 }
 0x105   : > { %v1884_v55 = vmul.f32 %v3073_v60, %v3510_v9  ;;  %v3526_v51 = vmul.f32 %v3073_v60, %v3514_v26  ;;  %v1941_v53 = vsel %vm407_vm1, %v1938_v41, %v1940_v46  ;;  %v1647_v59 = vsel %vm407_vm1, %v1645_v36, %v1646_v54 }
 0x106   : > { %v1446_v28 = vadd.f32 %v1430_v45, %v1389_v43  ;;  %v1727_v50 = vmul.f32 %v3510_v9, %v2500_v19  ;;  %v1862_v30 = vadd.f32 %v1821_v17, %v1742_v21  ;;  %v1822_v5 = vrot.slane %v1764_v34, 1 }
 0x107   : > { %v1823_v42 = vrot.slane %v3520_v2, 1  ;;  %v1150_v63 = vmul.f32 %v3365_v8, %v2481_v11  ;;  %v1942_v57 = vrot.slane %v1884_v55, 2  ;;  %v1172_v10 = vmul.f32 %v2188_v32, %v2483_v12 }
 0x108   : > { %v1566_v62 = vadd.f32 %v1527_v1, %v1446_v28  ;;  %v1292_v41 = vmul.f32 %v2188_v32, %v2485_v13  ;;  %v1982_v0 = vadd.f32 %v1941_v53, %v1862_v30  ;;  %v1943_v46 = vrot.slane %v3526_v51, 2 }
 0x109   : > { %v1431_v44 = vmul.f32 %v3437_v24, %v2498_v18  ;;  %v1469_v58 = vmul.f32 %v2212_v38, %v2492_v14  ;;  %v1231_v33 = vrot.slane %v1172_v10, 1  ;;  %v1589_v8 = vmul.f32 %v2212_v38, %v2494_v15 }
 0x10a   : > { %v1686_v6 = vadd.f32 %v1647_v59, %v1566_v62  ;;  %v1351_v7 = vrot.slane %v1292_v41, 2  ;;  %2252 = vst [vmem:[%s2603_s6 + $0xc8] sm:$0xff] %v1982_v0  ;;  %v1824_v37 = vsel %vm282_vm0, %v1822_v5, %v1823_v42  ;;  %v1766_v56 = vmul.f32 %v2236_v52, %v2511_v25  ;;  %v3589_v0 = vld [vmem:[%s2490_s29 + $0x188] sm:$0xff] }
 0x10b   : > { %v1528_v39 = vrot.slane %v1469_v58, 1  ;;  %v1886_v22 = vmul.f32 %v3073_v60, %v2236_v52  ;;  %v1232_v61 = vsel %vm282_vm0, %v1229_v47, %v1231_v33  ;;  %v1648_v23 = vrot.slane %v1589_v8, 2  ;;  %v2191_v8 = vld [vmem:[%s2490_s29 + $0x160] sm:$0x3] }
 0x10c   : > { %v1743_v45 = vadd.f32 %v1727_v50, %v1686_v6  ;;  %v1352_v48 = vsel %vm407_vm1, %v1349_v4, %v1351_v7  ;;  %v1944_v49 = vsel %vm407_vm1, %v1942_v57, %v1943_v46  ;;  %v1270_v16 = vadd.f32 %v1232_v61, %v1150_v63  ;;  %v3585_v57 = vld [vmem:[%s2490_s29 + $0x180] sm:$0xff]  ;;  %v3601_v7 = vld [vmem:[%s3760_s1 + $0x8] ss:$0 sm:$0xff] }
 0x10d   : > { %v1529_v27 = vsel %vm282_vm0, %v1526_v20, %v1528_v39  ;;  %v1728_v31 = vmul.f32 %v3514_v26, %v2500_v19  ;;  %v1825_v40 = vrot.slane %v1766_v56, 1  ;;  %v1945_v17 = vrot.slane %v1886_v22, 2  ;;  %v2215_v22 = vld [vmem:[%s2490_s29 + $0x178] sm:$0x3] }
 0x10e   : > { %v1863_v3 = vadd.f32 %v1824_v37, %v1743_v45  ;;  %v1173_v60 = vmul.f32 %v3433_v35, %v2483_v12  ;;  %v1390_v29 = vadd.f32 %v1352_v48, %v1270_v16  ;;  %v1649_v47 = vsel %vm407_vm1, %v1646_v54, %v1648_v23 }
 0x10f   : > { %v1151_v4 = vmul.f32 %v3433_v35, %v2481_v11  ;;  %v3564_v36 = vmul.f32 %v3437_v24, %v2483_v12  ;;  %v1293_v1 = vmul.f32 %v3433_v35, %v2485_v13  ;;  %v1294_v34 = vmul.f32 %v3437_v24, %v2485_v13 }
 0x110   : > { %v1983_v20 = vadd.f32 %v1944_v49, %v1863_v3  ;;  %v1233_v43 = vrot.slane %v1173_v60, 1  ;;  %v1447_v21 = vadd.f32 %v1431_v44, %v1390_v29  ;;  %v1432_v54 = vmul.f32 %v3510_v9, %v2498_v18  ;;  %v2239_v29 = vld [vmem:[%s2490_s29 + $0x190] sm:$0x3] }
 0x111   : > { %v1234_v2 = vrot.slane %v3564_v36, 1  ;;  %v1470_v55 = vmul.f32 %v3510_v9, %v2492_v14  ;;  %v1353_v51 = vrot.slane %v1293_v1, 2  ;;  %v1354_v32 = vrot.slane %v1294_v34, 2 }
 0x112   : > { %2253 = vst [vmem:[%s2603_s6 + $0xd0] sm:$0xff] %v1983_v20  ;;  %v1471_v35 = vmul.f32 %v3514_v26, %v2492_v14  ;;  %v1590_v53 = vmul.f32 %v3510_v9, %v2494_v15  ;;  %v1567_v28 = vadd.f32 %v1529_v27, %v1447_v21  ;;  %v1591_v38 = vmul.f32 %v3514_v26, %v2494_v15 }
 0x113   : > { %v1235_v59 = vsel %vm282_vm0, %v1233_v43, %v1234_v2  ;;  %v1530_v50 = vrot.slane %v1470_v55, 1  ;;  %v1355_v5 = vsel %vm407_vm1, %v1353_v51, %v1354_v32  ;;  %v1826_v41 = vsel %vm282_vm0, %v1823_v42, %v1825_v40 }
 0x114   : > { %v1271_v30 = vadd.f32 %v1235_v59, %v1151_v4  ;;  %v1531_v63 = vrot.slane %v1471_v35, 1  ;;  %v1650_v62 = vrot.slane %v1590_v53, 2  ;;  %v1687_v10 = vadd.f32 %v1649_v47, %v1567_v28 }
 0x115   : > { %v1651_v52 = vrot.slane %v1591_v38, 2  ;;  %v1767_v44 = vmul.f32 %v3585_v57, %v2511_v25  ;;  %v1946_v58 = vsel %vm407_vm1, %v1943_v46, %v1945_v17  ;;  %v3596_v33 = vmul.f32 %v3589_v0, %v2511_v25 }
 0x116   : > { %v1391_v6 = vadd.f32 %v1355_v5, %v1271_v30  ;;  %v1887_v42 = vmul.f32 %v3601_v7, %v3585_v57  ;;  %v1744_v37 = vadd.f32 %v1728_v31, %v1687_v10  ;;  %v1532_v39 = vsel %vm282_vm0, %v1530_v50, %v1531_v63 }
 0x117   : > { %v1827_v56 = vrot.slane %v1767_v44, 1  ;;  %v3609_v46 = vmul.f32 %v3601_v7, %v3589_v0  ;;  %v1652_v61 = vsel %vm407_vm1, %v1650_v62, %v1651_v52  ;;  %v1729_v48 = vmul.f32 %v3585_v57, %v2500_v19 }
 0x118   : > { %v1448_v45 = vadd.f32 %v1432_v54, %v1391_v6  ;;  %v1828_v23 = vrot.slane %v3596_v33, 1  ;;  %v1864_v49 = vadd.f32 %v1826_v41, %v1744_v37  ;;  %v1947_v16 = vrot.slane %v1887_v42, 2 }
 0x119   : > { %v1175_v27 = vmul.f32 %v2191_v8, %v2483_v12  ;;  %v1295_v31 = vmul.f32 %v2191_v8, %v2485_v13  ;;  %v1948_v40 = vrot.slane %v3609_v46, 2  ;;  %v1152_v17 = vmul.f32 %v3437_v24, %v2481_v11 }
 0x11a   : > { %v1568_v3 = vadd.f32 %v1532_v39, %v1448_v45  ;;  %v1472_v60 = vmul.f32 %v2215_v22, %v2492_v14  ;;  %v1984_v47 = vadd.f32 %v1946_v58, %v1864_v49  ;;  %v1829_v4 = vsel %vm282_vm0, %v1827_v56, %v1828_v23 }
 0x11b   : > { %v1236_v36 = vrot.slane %v1175_v27, 1  ;;  %v1356_v20 = vrot.slane %v1295_v31, 2  ;;  %v1433_v1 = vmul.f32 %v3514_v26, %v2498_v18  ;;  %v1592_v21 = vmul.f32 %v2215_v22, %v2494_v15 }
 0x11c   : > { %v1688_v43 = vadd.f32 %v1652_v61, %v1568_v3  ;;  %v1533_v34 = vrot.slane %v1472_v60, 1  ;;  %2254 = vst [vmem:[%s2603_s6 + $0xd8] sm:$0xff] %v1984_v47  ;;  %v1769_v55 = vmul.f32 %v2239_v29, %v2511_v25  ;;  %v1889_v51 = vmul.f32 %v3601_v7, %v2239_v29  ;;  %v2241_v3 = vld [vmem:[%s2490_s29 + $0x1a0] sm:$0xff] }
 0x11d   : > { %v1237_v54 = vsel %vm282_vm0, %v1234_v2, %v1236_v36  ;;  %v1357_v24 = vsel %vm407_vm1, %v1354_v32, %v1356_v20  ;;  %v1949_v53 = vsel %vm407_vm1, %v1947_v16, %v1948_v40  ;;  %v1653_v59 = vrot.slane %v1592_v21, 2 }
 0x11e   : > { %v1745_v35 = vadd.f32 %v1729_v48, %v1688_v43  ;;  %v1272_v28 = vadd.f32 %v1237_v54, %v1152_v17  ;;  %v1534_v50 = vsel %vm282_vm0, %v1531_v63, %v1533_v34  ;;  %v1730_v38 = vmul.f32 %v3589_v0, %v2500_v19  ;;  %v2240_v48 = vld [vmem:[%s2490_s29 + $0x198] sm:$0xff] }
 0x11f   : > { %v1830_v30 = vrot.slane %v1769_v55, 1  ;;  %v1176_v2 = vmul.f32 %v3510_v9, %v2483_v12  ;;  %v1950_v62 = vrot.slane %v1889_v51, 2  ;;  %v3642_v10 = vmul.f32 %v3514_v26, %v2483_v12  ;;  %v2194_v54 = vld [vmem:[%s2490_s29 + $0x178] sm:$0x3]  ;;  %v2218_v51 = vld [vmem:[%s2490_s29 + $0x190] sm:$0x3] }
 0x120   : > { %v1865_v32 = vadd.f32 %v1829_v4, %v1745_v35  ;;  %v1392_v5 = vadd.f32 %v1357_v24, %v1272_v28  ;;  %v1654_v41 = vsel %vm407_vm1, %v1651_v52, %v1653_v59  ;;  %v1153_v63 = vmul.f32 %v3510_v9, %v2481_v11 }
 0x121   : > { %v1238_v44 = vrot.slane %v1176_v2, 1  ;;  %v1296_v58 = vmul.f32 %v3510_v9, %v2485_v13  ;;  %v1239_v42 = vrot.slane %v3642_v10, 1  ;;  %v1297_v8 = vmul.f32 %v3514_v26, %v2485_v13 }
 0x122   : > { %v1985_v6 = vadd.f32 %v1949_v53, %v1865_v32  ;;  %v1449_v33 = vadd.f32 %v1433_v1, %v1392_v5  ;;  %v1434_v52 = vmul.f32 %v3585_v57, %v2498_v18  ;;  %v1473_v39 = vmul.f32 %v3585_v57, %v2492_v14 }
 0x123   : > { %v1358_v37 = vrot.slane %v1296_v58, 2  ;;  %v1474_v56 = vmul.f32 %v3589_v0, %v2492_v14  ;;  %v1240_v22 = vsel %vm282_vm0, %v1238_v44, %v1239_v42  ;;  %v1359_v45 = vrot.slane %v1297_v8, 2  ;;  %v2242_v58 = vld [vmem:[%s2490_s29 + $0x1a8] sm:$0x3]  ;;  %s2331_s29 = scalar_lea.vmem %s2330_s28, 8192 }
 0x124   : > { %2255 = vst [vmem:[%s2603_s6 + $0xe0] sm:$0xff] %v1985_v6  ;;  %v1569_v9 = vadd.f32 %v1534_v50, %v1449_v33  ;;  %v1593_v61 = vmul.f32 %v3585_v57, %v2494_v15  ;;  %v1273_v49 = vadd.f32 %v1240_v22, %v1153_v63  ;;  %v1535_v16 = vrot.slane %v1473_v39, 1  ;;  %p2333_p2 = scmp.lt.s32.totalorder %s2331_s29, %s2325_s12 }
 0x125   : > { %v1536_v27 = vrot.slane %v1474_v56, 1  ;;  %v1594_v31 = vmul.f32 %v3589_v0, %v2494_v15  ;;  %v1831_v60 = vsel %vm282_vm0, %v1828_v23, %v1830_v30  ;;  %v1360_v29 = vsel %vm407_vm1, %v1358_v37, %v1359_v45 }
 0x126   : > { %v1689_v17 = vadd.f32 %v1654_v41, %v1569_v9  ;;  %v1655_v47 = vrot.slane %v1593_v61, 2  ;;  %v1393_v4 = vadd.f32 %v1360_v29, %v1273_v49  ;;  %v1770_v20 = vmul.f32 %v2240_v48, %v2511_v25  ;;  %p2334_p3 = por %p2333_p2, %p2332_p1 }
 0x127   : > { %v1537_v36 = vsel %vm282_vm0, %v1535_v16, %v1536_v27  ;;  %v1656_v57 = vrot.slane %v1594_v31, 2  ;;  %v1771_v1 = vmul.f32 %v2241_v3, %v2511_v25  ;;  %v1890_v34 = vmul.f32 %v3601_v7, %v2240_v48 }
 0x128   : > { %v1746_v43 = vadd.f32 %v1730_v38, %v1689_v17  ;;  %v1891_v21 = vmul.f32 %v3601_v7, %v2241_v3  ;;  %v1951_v23 = vsel %vm407_vm1, %v1948_v40, %v1950_v62  ;;  %v1450_v24 = vadd.f32 %v1434_v52, %v1393_v4  ;;  %p2335_p5 = pnand %p2334_p3, %p2328_p0 }
 0x129   : > { %v1731_v55 = vmul.f32 %v2240_v48, %v2500_v19  ;;  %v1657_v53 = vsel %vm407_vm1, %v1655_v47, %v1656_v57  ;;  %v1832_v28 = vrot.slane %v1770_v20, 1  ;;  %v1833_v59 = vrot.slane %v1771_v1, 1 }
 0x12a   : > { %v1866_v35 = vadd.f32 %v1831_v60, %v1746_v43  ;;  %v1570_v50 = vadd.f32 %v1537_v36, %v1450_v24  ;;  %v1154_v38 = vmul.f32 %v3514_v26, %v2481_v11  ;;  %v1178_v30 = vmul.f32 %v2194_v54, %v2483_v12 }
 0x12b   : > { %v1298_v46 = vmul.f32 %v2194_v54, %v2485_v13  ;;  %v1952_v2 = vrot.slane %v1890_v34, 2  ;;  %v1953_v32 = vrot.slane %v1891_v21, 2  ;;  %v1475_v5 = vmul.f32 %v2218_v51, %v2492_v14 }
 0x12c   : > { %v1986_v40 = vadd.f32 %v1951_v23, %v1866_v35  ;;  %v1690_v62 = vadd.f32 %v1657_v53, %v1570_v50  ;;  %v1241_v10 = vrot.slane %v1178_v30, 1  ;;  %v1595_v63 = vmul.f32 %v2218_v51, %v2494_v15 }
 0x12d   : > { %v1361_v41 = vrot.slane %v1298_v46, 2  ;;  %v1834_v44 = vsel %vm282_vm0, %v1832_v28, %v1833_v59  ;;  %v1538_v26 = vrot.slane %v1475_v5, 1  ;;  %v1954_v6 = vsel %vm407_vm1, %v1952_v2, %v1953_v32 }
 0x12e   : > { %2256 = vst [vmem:[%s2603_s6 + $0xe8] sm:$0xff] %v1986_v40  ;;  %v1747_v11 = vadd.f32 %v1731_v55, %v1690_v62  ;;  %v1242_v12 = vsel %vm282_vm0, %v1239_v42, %v1241_v10  ;;  %v1435_v14 = vmul.f32 %v3589_v0, %v2498_v18  ;;  %v1658_v37 = vrot.slane %v1595_v63, 2 }
 0x12f   : > { %v1362_v13 = vsel %vm407_vm1, %v1359_v45, %v1361_v41  ;;  %v1274_v33 = vadd.f32 %v1242_v12, %v1154_v38  ;;  %v1772_v15 = vmul.f32 %v2242_v58, %v2511_v25  ;;  %v1539_v56 = vsel %vm282_vm0, %v1536_v27, %v1538_v26 }
 0x130   : > { %v1867_v8 = vadd.f32 %v1834_v44, %v1747_v11  ;;  %v1892_v42 = vmul.f32 %v3601_v7, %v2242_v58  ;;  %v1659_v22 = vsel %vm407_vm1, %v1656_v57, %v1658_v37  ;;  %v1732_v0 = vmul.f32 %v2241_v3, %v2500_v19 }
 0x131   : > { %v1394_v52 = vadd.f32 %v1362_v13, %v1274_v33  ;;  %v1835_v45 = vrot.slane %v1772_v15, 1 }
 0x132   : > { %v1987_v39 = vadd.f32 %v1954_v6, %v1867_v8  ;;  %v1955_v61 = vrot.slane %v1892_v42, 2 }
 0x133   : > { %v1451_v9 = vadd.f32 %v1435_v14, %v1394_v52  ;;  %v1836_v48 = vsel %vm282_vm0, %v1833_v59, %v1835_v45 }
 0x134   : > { %2257 = vst [vmem:[%s2603_s6 + $0xf0] sm:$0xff] %v1987_v39  ;;  %v1956_v7 = vsel %vm407_vm1, %v1953_v32, %v1955_v61 }
 0x135   : > { %v1571_v18 = vadd.f32 %v1539_v56, %v1451_v9 }
 0x137   : > { %v1691_v25 = vadd.f32 %v1659_v22, %v1571_v18 }
 0x139   : > { %v1748_v49 = vadd.f32 %v1732_v0, %v1691_v25 }
 0x13b   : > { %v1868_v16 = vadd.f32 %v1836_v48, %v1748_v49 }
 0x13d   : > { %v1988_v19 = vadd.f32 %v1956_v7, %v1868_v16 }
 0x13f   : > { %2258 = vst [vmem:[%s2603_s6 + $0xf8] sm:$0xff] %v1988_v19 }
 0x140   : > { %2338 = shalt.err (!%p2335_p5)
}
 0x141   : > { %s2339_s30 = scalar_lea.hbm %s3707_s25, 4096  ;;  %s2343_s5 = scalar_lea.hbm %s3761_s2, 8192 }
 0x142   : > { %p2340_p6 = scmp.ne.s32.totalorder %s3707_s25, %s2339_s30  ;;  %p2344_p10 = scmp.lt.s32.totalorder %s3707_s25, %s3761_s2 }
 0x143   : > { %p2345_p11 = scmp.lt.s32.totalorder %s2343_s5, %s2339_s30 }
 0x144   : > { %p2341_p7 = pnand %p2340_p6, %p2461_p4 }
 0x145   : > { %p2346_p12 = por %p2345_p11, %p2344_p10 }
 0x146   : > { %p2342_p9 = pneg %p2341_p7 }
 0x148   : > { %p2347_p13 = pnand %p2346_p12, %p2342_p9 }
 0x14a   : > { %2350 = shalt.err (!%p2347_p13)
}
 0x14b   : > { %s2404_s8 = smov 128   ;;  %s2405_s15 = smov 8  }
 0x14c   : > { %2266 = dma.vmem_to_hbm [thread:$0]  (%p2461_p4), %s3709_s20, 4096, %s3707_s25, %s3714_s26, %s2404_s8, %s2404_s8, %s2405_s15  }
 0x14d PF: > { %p2272_p0 = scmp.ge.s32.totalorder %s2401_s14, 2  ;;  %s2036_s16 = sand.u32 1, %s2381_s9  }
 0x14e   : > { %s2037_s18 = scalar_lea.sflag [#allocation3], %s2036_s16 }
 0x14f   : > { %p2269_p1 = pnand %p2272_p0, %p2468_p8 }
 0x151   : > { %p2270_p2 = pneg %p2269_p1 }
 0x153   : > { %2376 = dma.done.wait (%p2270_p2), %s2037_s18, 4096  }
 0x154   : > { %2378 = vsyncadd (%p2270_p2), %s2037_s18, 4294963200  ;;  %s15_s14 = sadd.s32 1, %s2401_s14   ;;  %s3764_s9 = smov %s2385_s10 }
 0x155   : > { %p12_p3 = scmp.ge.s32.totalorder %s15_s14, 4   ;;  %s3765_s10 = smov %s2389_s11 }
 0x156   : > { %s3766_s11 = smov %s2474_s22  ;;  %s3767_s12 = smov %s2397_s13 }
 0x157   : > { %s3768_s13 = smov %s3770_s17  ;;  %14 = sbr.rel (!%p12_p3) target bundleno = 4 (0x4), region = 72 }
 0x15c   :  { %2042 = vsyncpa [#allocation3], 1 }
 0x15d   :  { %2044 = vsyncpa [#allocation3 + $0x1], 1 }

</bundles_post_ra>
